<compile_context>
chip_gen: v7x
topology: tpu7x:2x2x1
jax: 0.10.0
libtpu: 0.0.40
codegen_flags: <defaults>
</compile_context>

<pallas_src>
import jax
import jax.numpy as jnp
from jax.experimental import pallas as pl
from jax.experimental.pallas import tpu as pltpu

EPS = 1e-5
K = 3  # kernel size (module default)


def _padded_tile_bytes(shape, itemsize):
    """Approximate VMEM bytes of one block after (8,128) tile padding."""
    s = list(shape)
    if len(s) >= 2:
        s[-1] = -(-s[-1] // 128) * 128
        s[-2] = -(-s[-2] // 8) * 8
    n = 1
    for v in s:
        n *= v
    return n * itemsize


def conv_block_forward(x_nchw, w, bias, gamma, beta):
    """ConvBlock forward: 3x3 conv (stride 1, pad 1, bias) + BatchNorm2d (batch
    statistics) + ReLU.  x_nchw: (N,Cin,H,W); w: (Cout,Cin,3,3) (PyTorch layout);
    bias/gamma/beta: (Cout,).  Returns (N,Cout,H,W) float32."""
    N, Cin, H, W = x_nchw.shape
    Cout = w.shape[0]
    Hp, Wp = H + 2, W + 2
    P = Hp * Wp              # flattened padded frame (lane axis of every big tile)
    OFF = Wp + 1             # max |tap shift|; slack zeros on both ends of the slab
    L = P + 2 * OFF

    # ---- glue (fusable pad + cast, ~1x input bytes; no transposes) ---------------
    xpad = jnp.pad(x_nchw, ((0, 0), (0, 0), (1, 1), (1, 1)))            # (N,Cin,Hp,Wp)
    slab = jnp.pad(xpad.reshape(N, Cin, P),
                   ((0, 0), (0, 0), (OFF, OFF))).astype(jnp.bfloat16)   # (N,Cin,L)
    w_taps = jnp.transpose(w, (2, 3, 0, 1)).reshape(K * K, Cout, Cin
                                                    ).astype(jnp.bfloat16)
    b2 = bias.reshape(Cout, 1).astype(jnp.float32)
    # valid-position mask over the padded frame (border columns carry garbage)
    mask = jnp.pad(jnp.ones((H, W), jnp.float32), ((1, 1), (1, 1))).reshape(1, P)

    # tap (kh,kw) of padded-frame position p lives at slab column OFF + p + shift
    shifts = [(kh - 1) * Wp + (kw - 1) for kh in range(K) for kw in range(K)]

    # ---- pass 1: conv (+bias) in the padded frame + masked per-image stats -------
    def conv_stats_kernel(x_ref, w_ref, b_ref, m_ref, y_ref, s1_ref, s2_ref):
        # x_ref (1,Cin,L) bf16 | w_ref (9,Cout,Cin) bf16 | b_ref (Cout,1) f32
        # m_ref (1,P) f32 | y_ref (1,Cout,P) bf16 | s1_ref/s2_ref (1,Cout,1) f32
        acc = None
        for t, d in enumerate(shifts):
            xs = x_ref[0, :, OFF + d: OFF + d + P]            # (Cin,P) static slice
            part = jnp.dot(w_ref[t], xs, preferred_element_type=jnp.float32)
            acc = part if acc is None else acc + part
        acc = acc + b_ref[...]                                # (Cout,P) f32
        y_ref[0] = acc.astype(jnp.bfloat16)                   # bf16 intermediate
        m = m_ref[...]                                        # (1,P)
        s1_ref[0] = jnp.sum(acc * m, axis=1, keepdims=True)
        s2_ref[0] = jnp.sum(acc * acc * m, axis=1, keepdims=True)

    per_step = (_padded_tile_bytes((1, Cin, L), 2)
                + _padded_tile_bytes((K * K, Cout, Cin), 2)
                + _padded_tile_bytes((Cout, 1), 4)
                + _padded_tile_bytes((1, P), 4)
                + _padded_tile_bytes((1, Cout, P), 2)
                + 2 * _padded_tile_bytes((1, Cout, 1), 4))
    # double-buffered pipeline + headroom; >=32 MiB lifts v5e's 16 MiB default,
    # <=56 MiB keeps headroom on v7x's 64 MiB physical VMEM per TensorCore.
    vmem_limit = int(min(max(3 * per_step, 32 << 20), 56 << 20))

    flops1 = 2 * N * P * (K * K) * Cin * Cout
    bytes1 = ((slab.size + w_taps.size) * 2 + b2.size * 4 + mask.size * 4
              + N * Cout * P * 2 + 2 * N * Cout * 4)
    y, s1, s2 = pl.pallas_call(
        conv_stats_kernel,
        grid=(N,),
        in_specs=[
            pl.BlockSpec((1, Cin, L), lambda n: (n, 0, 0)),
            pl.BlockSpec((K * K, Cout, Cin), lambda n: (0, 0, 0)),
            pl.BlockSpec((Cout, 1), lambda n: (0, 0)),
            pl.BlockSpec((1, P), lambda n: (0, 0)),
        ],
        out_specs=(
            pl.BlockSpec((1, Cout, P), lambda n: (n, 0, 0)),
            pl.BlockSpec((1, Cout, 1), lambda n: (n, 0, 0)),
            pl.BlockSpec((1, Cout, 1), lambda n: (n, 0, 0)),
        ),
        out_shape=(
            jax.ShapeDtypeStruct((N, Cout, P), jnp.bfloat16),
            jax.ShapeDtypeStruct((N, Cout, 1), jnp.float32),
            jax.ShapeDtypeStruct((N, Cout, 1), jnp.float32),
        ),
        compiler_params=pltpu.CompilerParams(
            dimension_semantics=("parallel",), vmem_limit_bytes=vmem_limit),
        cost_estimate=pl.CostEstimate(flops=flops1, transcendentals=0,
                                      bytes_accessed=bytes1),
    )(slab, w_taps, b2, mask)

    # ---- combine per-image sums -> batch mean / biased var (as BN normalizes) ----
    cnt = float(N * H * W)
    tot = jnp.sum(s1[:, :, 0], axis=0)                        # (Cout,)
    tot2 = jnp.sum(s2[:, :, 0], axis=0)
    mean = tot / cnt
    var = jnp.maximum(tot2 / cnt - mean * mean, 0.0)
    scale = gamma.astype(jnp.float32) * jax.lax.rsqrt(var + EPS)
    shift = beta.astype(jnp.float32) - mean * scale
    scale3 = scale.reshape(Cout, 1, 1)
    shift3 = shift.reshape(Cout, 1, 1)

    # ---- pass 2: slice valid window, normalize + ReLU, write NCHW directly -------
    y4 = y.reshape(N, Cout, Hp, Wp)                           # metadata-only reshape

    def bn_relu_kernel(y_ref, sc_ref, sh_ref, o_ref):
        yv = y_ref[0].astype(jnp.float32)                     # (Cout,Hp,Wp)
        yv = yv[:, 1:H + 1, 1:W + 1]                          # valid (Cout,H,W)
        o_ref[0] = jnp.maximum(yv * sc_ref[...] + sh_ref[...], 0.0)

    flops2 = 3 * N * Cout * H * W
    bytes2 = N * Cout * P * 2 + 2 * Cout * 4 + N * Cout * H * W * 4
    out = pl.pallas_call(
        bn_relu_kernel,
        grid=(N,),
        in_specs=[
            pl.BlockSpec((1, Cout, Hp, Wp), lambda n: (n, 0, 0, 0)),
            pl.BlockSpec((Cout, 1, 1), lambda n: (0, 0, 0)),
            pl.BlockSpec((Cout, 1, 1), lambda n: (0, 0, 0)),
        ],
        out_specs=pl.BlockSpec((1, Cout, H, W), lambda n: (n, 0, 0, 0)),
        out_shape=jax.ShapeDtypeStruct((N, Cout, H, W), jnp.float32),
        compiler_params=pltpu.CompilerParams(
            dimension_semantics=("parallel",), vmem_limit_bytes=vmem_limit),
        cost_estimate=pl.CostEstimate(flops=flops2, transcendentals=0,
                                      bytes_accessed=bytes2),
    )(y4, scale3, shift3)
    return out


def reference(x, w, bias, gamma, beta):
    """Pure-JAX/XLA reference (f32 conv + batch-stat BN + ReLU)."""
    y = jax.lax.conv_general_dilated(
        x.astype(jnp.float32), w.astype(jnp.float32),
        window_strides=(1, 1), padding=[(1, 1), (1, 1)],
        dimension_numbers=("NCHW", "OIHW", "NCHW"))
    y = y + bias[None, :, None, None]
    mean = jnp.mean(y, axis=(0, 2, 3), keepdims=True)
    var = jnp.mean(jnp.square(y - mean), axis=(0, 2, 3), keepdims=True)
    y = (y - mean) * jax.lax.rsqrt(var + EPS)
    y = y * gamma[None, :, None, None] + beta[None, :, None, None]
    return jnp.maximum(y, 0.0)


if __name__ == "__main__":
    N, Cin, Cout, H, W = 2, 4, 8, 16, 16

    key = jax.random.PRNGKey(0)
    kx, kw_, kb, kg, kbt = jax.random.split(key, 5)
    # Pre-round MXU operands to bf16 so kernel and f32 reference see identical
    # operand values; remaining differences are accumulation order plus the bf16
    # storage of the conv intermediate y (hence the tolerance below).
    x = jax.random.normal(kx, (N, Cin, H, W), jnp.float32
                          ).astype(jnp.bfloat16).astype(jnp.float32)
    w = (jax.random.normal(kw_, (Cout, Cin, K, K), jnp.float32) * 0.1
         ).astype(jnp.bfloat16).astype(jnp.float32)
    bias = jax.random.normal(kb, (Cout,), jnp.float32) * 0.1
    gamma = 1.0 + 0.1 * jax.random.normal(kg, (Cout,), jnp.float32)
    beta = 0.1 * jax.random.normal(kbt, (Cout,), jnp.float32)

    fwd = jax.jit(conv_block_forward)
    out = jax.block_until_ready(fwd(x, w, bias, gamma, beta))
    ref = jax.block_until_ready(reference(x, w, bias, gamma, beta))

    assert out.shape == (N, Cout, H, W), out.shape
    err = float(jnp.max(jnp.abs(out - ref)))
    assert jnp.allclose(out, ref, atol=3e-2, rtol=3e-2), err
    print("KERNEL_OK")
</pallas_src>

<mosaic_0001>
module attributes {stable_mosaic.version = 11 : i64} {
  func.func @conv_stats_kernel(%arg0: i32, %arg1: memref<1x4x362xbf16, #tpu.memory_space<vmem>>, %arg2: memref<9x8x4xbf16, #tpu.memory_space<vmem>>, %arg3: memref<8x1xf32, #tpu.memory_space<vmem>>, %arg4: memref<1x324xf32, #tpu.memory_space<vmem>>, %arg5: memref<1x8x324xbf16, #tpu.memory_space<vmem>>, %arg6: memref<1x8x1xf32, #tpu.memory_space<vmem>>, %arg7: memref<1x8x1xf32, #tpu.memory_space<vmem>>) attributes {dimension_semantics = [#tpu.dimension_semantics<parallel>], iteration_bounds = array<i64: 2>, scalar_prefetch = 0 : i64, scratch_operands = 0 : i64, tpu.core_type = #tpu.core_type<tc>, window_params = [{transform_indices = @transform_0, window_bounds = array<i64: 1, 4, 362>}, {pipeline_mode = #tpu.pipeline_mode<synchronous>, transform_indices = @transform_1, window_bounds = array<i64: 9, 8, 4>}, {pipeline_mode = #tpu.pipeline_mode<synchronous>, transform_indices = @transform_2, window_bounds = array<i64: 8, 1>}, {pipeline_mode = #tpu.pipeline_mode<synchronous>, transform_indices = @transform_3, window_bounds = array<i64: 1, 324>}, {transform_indices = @transform_4, window_bounds = array<i64: 1, 8, 324>}, {transform_indices = @transform_5, window_bounds = array<i64: 1, 8, 1>}, {transform_indices = @transform_6, window_bounds = array<i64: 1, 8, 1>}]} {
    %c0 = arith.constant 0 : index
    %c0_0 = arith.constant 0 : index
    %c0_1 = arith.constant 0 : index
    %0 = vector.load %arg1[%c0, %c0_0, %c0_1] : memref<1x4x362xbf16, #tpu.memory_space<vmem>>, vector<1x4x324xbf16>
    %1 = vector.shape_cast %0 : vector<1x4x324xbf16> to vector<4x324xbf16>
    %c0_2 = arith.constant 0 : index
    %c0_3 = arith.constant 0 : index
    %c0_4 = arith.constant 0 : index
    %2 = vector.load %arg2[%c0_2, %c0_3, %c0_4] : memref<9x8x4xbf16, #tpu.memory_space<vmem>>, vector<1x8x4xbf16>
    %3 = vector.shape_cast %2 : vector<1x8x4xbf16> to vector<8x4xbf16>
    %cst = arith.constant dense<0.000000e+00> : vector<8x324xf32>
    %4 = tpu.matmul %3, %1, %cst {dimension_numbers = #tpu.dot_dimension_numbers<[1], [0], [0], [1], [0, 0, 1, 1], [], []>} : vector<8x4xbf16>, vector<4x324xbf16>, vector<8x324xf32> -> vector<8x324xf32>
    %c0_5 = arith.constant 0 : index
    %c0_6 = arith.constant 0 : index
    %c1 = arith.constant 1 : index
    %5 = vector.load %arg1[%c0_5, %c0_6, %c1] : memref<1x4x362xbf16, #tpu.memory_space<vmem>>, vector<1x4x324xbf16>
    %6 = vector.shape_cast %5 : vector<1x4x324xbf16> to vector<4x324xbf16>
    %c1_7 = arith.constant 1 : index
    %c0_8 = arith.constant 0 : index
    %c0_9 = arith.constant 0 : index
    %7 = vector.load %arg2[%c1_7, %c0_8, %c0_9] : memref<9x8x4xbf16, #tpu.memory_space<vmem>>, vector<1x8x4xbf16>
    %8 = vector.shape_cast %7 : vector<1x8x4xbf16> to vector<8x4xbf16>
    %cst_10 = arith.constant dense<0.000000e+00> : vector<8x324xf32>
    %9 = tpu.matmul %8, %6, %cst_10 {dimension_numbers = #tpu.dot_dimension_numbers<[1], [0], [0], [1], [0, 0, 1, 1], [], []>} : vector<8x4xbf16>, vector<4x324xbf16>, vector<8x324xf32> -> vector<8x324xf32>
    %10 = arith.addf %4, %9 : vector<8x324xf32>
    %c0_11 = arith.constant 0 : index
    %c0_12 = arith.constant 0 : index
    %c2 = arith.constant 2 : index
    %11 = vector.load %arg1[%c0_11, %c0_12, %c2] : memref<1x4x362xbf16, #tpu.memory_space<vmem>>, vector<1x4x324xbf16>
    %12 = vector.shape_cast %11 : vector<1x4x324xbf16> to vector<4x324xbf16>
    %c2_13 = arith.constant 2 : index
    %c0_14 = arith.constant 0 : index
    %c0_15 = arith.constant 0 : index
    %13 = vector.load %arg2[%c2_13, %c0_14, %c0_15] : memref<9x8x4xbf16, #tpu.memory_space<vmem>>, vector<1x8x4xbf16>
    %14 = vector.shape_cast %13 : vector<1x8x4xbf16> to vector<8x4xbf16>
    %cst_16 = arith.constant dense<0.000000e+00> : vector<8x324xf32>
    %15 = tpu.matmul %14, %12, %cst_16 {dimension_numbers = #tpu.dot_dimension_numbers<[1], [0], [0], [1], [0, 0, 1, 1], [], []>} : vector<8x4xbf16>, vector<4x324xbf16>, vector<8x324xf32> -> vector<8x324xf32>
    %16 = arith.addf %10, %15 : vector<8x324xf32>
    %c0_17 = arith.constant 0 : index
    %c0_18 = arith.constant 0 : index
    %c18 = arith.constant 18 : index
    %17 = vector.load %arg1[%c0_17, %c0_18, %c18] : memref<1x4x362xbf16, #tpu.memory_space<vmem>>, vector<1x4x324xbf16>
    %18 = vector.shape_cast %17 : vector<1x4x324xbf16> to vector<4x324xbf16>
    %c3 = arith.constant 3 : index
    %c0_19 = arith.constant 0 : index
    %c0_20 = arith.constant 0 : index
    %19 = vector.load %arg2[%c3, %c0_19, %c0_20] : memref<9x8x4xbf16, #tpu.memory_space<vmem>>, vector<1x8x4xbf16>
    %20 = vector.shape_cast %19 : vector<1x8x4xbf16> to vector<8x4xbf16>
    %cst_21 = arith.constant dense<0.000000e+00> : vector<8x324xf32>
    %21 = tpu.matmul %20, %18, %cst_21 {dimension_numbers = #tpu.dot_dimension_numbers<[1], [0], [0], [1], [0, 0, 1, 1], [], []>} : vector<8x4xbf16>, vector<4x324xbf16>, vector<8x324xf32> -> vector<8x324xf32>
    %22 = arith.addf %16, %21 : vector<8x324xf32>
    %c0_22 = arith.constant 0 : index
    %c0_23 = arith.constant 0 : index
    %c19 = arith.constant 19 : index
    %23 = vector.load %arg1[%c0_22, %c0_23, %c19] : memref<1x4x362xbf16, #tpu.memory_space<vmem>>, vector<1x4x324xbf16>
    %24 = vector.shape_cast %23 : vector<1x4x324xbf16> to vector<4x324xbf16>
    %c4 = arith.constant 4 : index
    %c0_24 = arith.constant 0 : index
    %c0_25 = arith.constant 0 : index
    %25 = vector.load %arg2[%c4, %c0_24, %c0_25] : memref<9x8x4xbf16, #tpu.memory_space<vmem>>, vector<1x8x4xbf16>
    %26 = vector.shape_cast %25 : vector<1x8x4xbf16> to vector<8x4xbf16>
    %cst_26 = arith.constant dense<0.000000e+00> : vector<8x324xf32>
    %27 = tpu.matmul %26, %24, %cst_26 {dimension_numbers = #tpu.dot_dimension_numbers<[1], [0], [0], [1], [0, 0, 1, 1], [], []>} : vector<8x4xbf16>, vector<4x324xbf16>, vector<8x324xf32> -> vector<8x324xf32>
    %28 = arith.addf %22, %27 : vector<8x324xf32>
    %c0_27 = arith.constant 0 : index
    %c0_28 = arith.constant 0 : index
    %c20 = arith.constant 20 : index
    %29 = vector.load %arg1[%c0_27, %c0_28, %c20] : memref<1x4x362xbf16, #tpu.memory_space<vmem>>, vector<1x4x324xbf16>
    %30 = vector.shape_cast %29 : vector<1x4x324xbf16> to vector<4x324xbf16>
    %c5 = arith.constant 5 : index
    %c0_29 = arith.constant 0 : index
    %c0_30 = arith.constant 0 : index
    %31 = vector.load %arg2[%c5, %c0_29, %c0_30] : memref<9x8x4xbf16, #tpu.memory_space<vmem>>, vector<1x8x4xbf16>
    %32 = vector.shape_cast %31 : vector<1x8x4xbf16> to vector<8x4xbf16>
    %cst_31 = arith.constant dense<0.000000e+00> : vector<8x324xf32>
    %33 = tpu.matmul %32, %30, %cst_31 {dimension_numbers = #tpu.dot_dimension_numbers<[1], [0], [0], [1], [0, 0, 1, 1], [], []>} : vector<8x4xbf16>, vector<4x324xbf16>, vector<8x324xf32> -> vector<8x324xf32>
    %34 = arith.addf %28, %33 : vector<8x324xf32>
    %c0_32 = arith.constant 0 : index
    %c0_33 = arith.constant 0 : index
    %c36 = arith.constant 36 : index
    %35 = vector.load %arg1[%c0_32, %c0_33, %c36] : memref<1x4x362xbf16, #tpu.memory_space<vmem>>, vector<1x4x324xbf16>
    %36 = vector.shape_cast %35 : vector<1x4x324xbf16> to vector<4x324xbf16>
    %c6 = arith.constant 6 : index
    %c0_34 = arith.constant 0 : index
    %c0_35 = arith.constant 0 : index
    %37 = vector.load %arg2[%c6, %c0_34, %c0_35] : memref<9x8x4xbf16, #tpu.memory_space<vmem>>, vector<1x8x4xbf16>
    %38 = vector.shape_cast %37 : vector<1x8x4xbf16> to vector<8x4xbf16>
    %cst_36 = arith.constant dense<0.000000e+00> : vector<8x324xf32>
    %39 = tpu.matmul %38, %36, %cst_36 {dimension_numbers = #tpu.dot_dimension_numbers<[1], [0], [0], [1], [0, 0, 1, 1], [], []>} : vector<8x4xbf16>, vector<4x324xbf16>, vector<8x324xf32> -> vector<8x324xf32>
    %40 = arith.addf %34, %39 : vector<8x324xf32>
    %c0_37 = arith.constant 0 : index
    %c0_38 = arith.constant 0 : index
    %c37 = arith.constant 37 : index
    %41 = vector.load %arg1[%c0_37, %c0_38, %c37] : memref<1x4x362xbf16, #tpu.memory_space<vmem>>, vector<1x4x324xbf16>
    %42 = vector.shape_cast %41 : vector<1x4x324xbf16> to vector<4x324xbf16>
    %c7 = arith.constant 7 : index
    %c0_39 = arith.constant 0 : index
    %c0_40 = arith.constant 0 : index
    %43 = vector.load %arg2[%c7, %c0_39, %c0_40] : memref<9x8x4xbf16, #tpu.memory_space<vmem>>, vector<1x8x4xbf16>
    %44 = vector.shape_cast %43 : vector<1x8x4xbf16> to vector<8x4xbf16>
    %cst_41 = arith.constant dense<0.000000e+00> : vector<8x324xf32>
    %45 = tpu.matmul %44, %42, %cst_41 {dimension_numbers = #tpu.dot_dimension_numbers<[1], [0], [0], [1], [0, 0, 1, 1], [], []>} : vector<8x4xbf16>, vector<4x324xbf16>, vector<8x324xf32> -> vector<8x324xf32>
    %46 = arith.addf %40, %45 : vector<8x324xf32>
    %c0_42 = arith.constant 0 : index
    %c0_43 = arith.constant 0 : index
    %c38 = arith.constant 38 : index
    %47 = vector.load %arg1[%c0_42, %c0_43, %c38] : memref<1x4x362xbf16, #tpu.memory_space<vmem>>, vector<1x4x324xbf16>
    %48 = vector.shape_cast %47 : vector<1x4x324xbf16> to vector<4x324xbf16>
    %c8 = arith.constant 8 : index
    %c0_44 = arith.constant 0 : index
    %c0_45 = arith.constant 0 : index
    %49 = vector.load %arg2[%c8, %c0_44, %c0_45] : memref<9x8x4xbf16, #tpu.memory_space<vmem>>, vector<1x8x4xbf16>
    %50 = vector.shape_cast %49 : vector<1x8x4xbf16> to vector<8x4xbf16>
    %cst_46 = arith.constant dense<0.000000e+00> : vector<8x324xf32>
    %51 = tpu.matmul %50, %48, %cst_46 {dimension_numbers = #tpu.dot_dimension_numbers<[1], [0], [0], [1], [0, 0, 1, 1], [], []>} : vector<8x4xbf16>, vector<4x324xbf16>, vector<8x324xf32> -> vector<8x324xf32>
    %52 = arith.addf %46, %51 : vector<8x324xf32>
    %c0_47 = arith.constant 0 : index
    %c0_48 = arith.constant 0 : index
    %53 = vector.load %arg3[%c0_47, %c0_48] : memref<8x1xf32, #tpu.memory_space<vmem>>, vector<8x1xf32>
    %54 = vector.broadcast %53 : vector<8x1xf32> to vector<8x324xf32>
    %55 = arith.addf %52, %54 : vector<8x324xf32>
    %56 = arith.truncf %55 : vector<8x324xf32> to vector<8x324xbf16>
    %c0_49 = arith.constant 0 : index
    %c0_50 = arith.constant 0 : index
    %c0_51 = arith.constant 0 : index
    %57 = vector.load %arg5[%c0_49, %c0_50, %c0_51] : memref<1x8x324xbf16, #tpu.memory_space<vmem>>, vector<1x8x324xbf16>
    %58 = vector.shape_cast %57 : vector<1x8x324xbf16> to vector<8x324xbf16>
    %59 = vector.shape_cast %56 : vector<8x324xbf16> to vector<1x8x324xbf16>
    tpu.vector_store %arg5[%c0_49, %c0_50, %c0_51], %59 {strides = array<i32>} : memref<1x8x324xbf16, #tpu.memory_space<vmem>>, vector<1x8x324xbf16>,
    %c0_52 = arith.constant 0 : index
    %c0_53 = arith.constant 0 : index
    %60 = vector.load %arg4[%c0_52, %c0_53] : memref<1x324xf32, #tpu.memory_space<vmem>>, vector<1x324xf32>
    %61 = vector.broadcast %60 : vector<1x324xf32> to vector<8x324xf32>
    %62 = arith.mulf %55, %61 : vector<8x324xf32>
    %cst_54 = arith.constant dense<0.000000e+00> : vector<8xf32>
    %63 = vector.multi_reduction <add>, %62, %cst_54 [1] : vector<8x324xf32> to vector<8xf32>
    %64 = vector.shape_cast %63 : vector<8xf32> to vector<8x1xf32>
    %c0_55 = arith.constant 0 : index
    %c0_56 = arith.constant 0 : index
    %c0_57 = arith.constant 0 : index
    %65 = vector.load %arg6[%c0_55, %c0_56, %c0_57] : memref<1x8x1xf32, #tpu.memory_space<vmem>>, vector<1x8x1xf32>
    %66 = vector.shape_cast %65 : vector<1x8x1xf32> to vector<8x1xf32>
    %67 = vector.shape_cast %64 : vector<8x1xf32> to vector<1x8x1xf32>
    tpu.vector_store %arg6[%c0_55, %c0_56, %c0_57], %67 {strides = array<i32>} : memref<1x8x1xf32, #tpu.memory_space<vmem>>, vector<1x8x1xf32>,
    %68 = arith.mulf %55, %55 : vector<8x324xf32>
    %69 = vector.broadcast %60 : vector<1x324xf32> to vector<8x324xf32>
    %70 = arith.mulf %68, %69 : vector<8x324xf32>
    %cst_58 = arith.constant dense<0.000000e+00> : vector<8xf32>
    %71 = vector.multi_reduction <add>, %70, %cst_58 [1] : vector<8x324xf32> to vector<8xf32>
    %72 = vector.shape_cast %71 : vector<8xf32> to vector<8x1xf32>
    %c0_59 = arith.constant 0 : index
    %c0_60 = arith.constant 0 : index
    %c0_61 = arith.constant 0 : index
    %73 = vector.load %arg7[%c0_59, %c0_60, %c0_61] : memref<1x8x1xf32, #tpu.memory_space<vmem>>, vector<1x8x1xf32>
    %74 = vector.shape_cast %73 : vector<1x8x1xf32> to vector<8x1xf32>
    %75 = vector.shape_cast %72 : vector<8x1xf32> to vector<1x8x1xf32>
    tpu.vector_store %arg7[%c0_59, %c0_60, %c0_61], %75 {strides = array<i32>} : memref<1x8x1xf32, #tpu.memory_space<vmem>>, vector<1x8x1xf32>,
    return
  }
  func.func @transform_0(%arg0: i32) -> (i32, i32, i32) {
    %c0_i32 = arith.constant 0 : i32
    %c0_i32_0 = arith.constant 0 : i32
    %c0_i32_1 = arith.constant 0 : i32
    return %arg0, %c0_i32, %c0_i32_0 : i32, i32, i32
  }
  func.func @transform_1(%arg0: i32) -> (i32, i32, i32) {
    %c0_i32 = arith.constant 0 : i32
    %c0_i32_0 = arith.constant 0 : i32
    %c0_i32_1 = arith.constant 0 : i32
    %c0_i32_2 = arith.constant 0 : i32
    return %c0_i32, %c0_i32_0, %c0_i32_1 : i32, i32, i32
  }
  func.func @transform_2(%arg0: i32) -> (i32, i32) {
    %c0_i32 = arith.constant 0 : i32
    %c0_i32_0 = arith.constant 0 : i32
    %c0_i32_1 = arith.constant 0 : i32
    return %c0_i32, %c0_i32_0 : i32, i32
  }
  func.func @transform_3(%arg0: i32) -> (i32, i32) {
    %c0_i32 = arith.constant 0 : i32
    %c0_i32_0 = arith.constant 0 : i32
    %c0_i32_1 = arith.constant 0 : i32
    return %c0_i32, %c0_i32_0 : i32, i32
  }
  func.func @transform_4(%arg0: i32) -> (i32, i32, i32) {
    %c0_i32 = arith.constant 0 : i32
    %c0_i32_0 = arith.constant 0 : i32
    %c0_i32_1 = arith.constant 0 : i32
    return %arg0, %c0_i32, %c0_i32_0 : i32, i32, i32
  }
  func.func @transform_5(%arg0: i32) -> (i32, i32, i32) {
    %c0_i32 = arith.constant 0 : i32
    %c0_i32_0 = arith.constant 0 : i32
    %c0_i32_1 = arith.constant 0 : i32
    return %arg0, %c0_i32, %c0_i32_0 : i32, i32, i32
  }
  func.func @transform_6(%arg0: i32) -> (i32, i32, i32) {
    %c0_i32 = arith.constant 0 : i32
    %c0_i32_0 = arith.constant 0 : i32
    %c0_i32_1 = arith.constant 0 : i32
    return %arg0, %c0_i32, %c0_i32_0 : i32, i32, i32
  }
}

module attributes {stable_mosaic.version = 11 : i64} {
  func.func @bn_relu_kernel(%arg0: i32, %arg1: memref<1x8x18x18xbf16, #tpu.memory_space<vmem>>, %arg2: memref<8x1x1xf32, #tpu.memory_space<vmem>>, %arg3: memref<8x1x1xf32, #tpu.memory_space<vmem>>, %arg4: memref<1x8x16x16xf32, #tpu.memory_space<vmem>>) attributes {dimension_semantics = [#tpu.dimension_semantics<parallel>], iteration_bounds = array<i64: 2>, scalar_prefetch = 0 : i64, scratch_operands = 0 : i64, tpu.core_type = #tpu.core_type<tc>, window_params = [{transform_indices = @transform_0, window_bounds = array<i64: 1, 8, 18, 18>}, {pipeline_mode = #tpu.pipeline_mode<synchronous>, transform_indices = @transform_1, window_bounds = array<i64: 8, 1, 1>}, {pipeline_mode = #tpu.pipeline_mode<synchronous>, transform_indices = @transform_2, window_bounds = array<i64: 8, 1, 1>}, {transform_indices = @transform_3, window_bounds = array<i64: 1, 8, 16, 16>}]} {
    %c0 = arith.constant 0 : index
    %c0_0 = arith.constant 0 : index
    %c0_1 = arith.constant 0 : index
    %c0_2 = arith.constant 0 : index
    %0 = vector.load %arg1[%c0, %c0_0, %c0_1, %c0_2] : memref<1x8x18x18xbf16, #tpu.memory_space<vmem>>, vector<1x8x18x18xbf16>
    %1 = vector.shape_cast %0 : vector<1x8x18x18xbf16> to vector<8x18x18xbf16>
    %2 = arith.extf %1 : vector<8x18x18xbf16> to vector<8x18x18xf32>
    %3 = vector.extract_strided_slice %2 {offsets = [0, 1, 1], sizes = [8, 16, 16], strides = [1, 1, 1]} : vector<8x18x18xf32> to vector<8x16x16xf32>
    %c0_3 = arith.constant 0 : index
    %c0_4 = arith.constant 0 : index
    %c0_5 = arith.constant 0 : index
    %4 = vector.load %arg2[%c0_3, %c0_4, %c0_5] : memref<8x1x1xf32, #tpu.memory_space<vmem>>, vector<8x1x1xf32>
    %5 = vector.broadcast %4 : vector<8x1x1xf32> to vector<8x16x16xf32>
    %6 = arith.mulf %3, %5 : vector<8x16x16xf32>
    %c0_6 = arith.constant 0 : index
    %c0_7 = arith.constant 0 : index
    %c0_8 = arith.constant 0 : index
    %7 = vector.load %arg3[%c0_6, %c0_7, %c0_8] : memref<8x1x1xf32, #tpu.memory_space<vmem>>, vector<8x1x1xf32>
    %8 = vector.broadcast %7 : vector<8x1x1xf32> to vector<8x16x16xf32>
    %9 = arith.addf %6, %8 : vector<8x16x16xf32>
    %cst = arith.constant 0.000000e+00 : f32
    %10 = vector.broadcast %cst : f32 to vector<8x16x16xf32>
    %11 = arith.maximumf %9, %10 : vector<8x16x16xf32>
    %c0_9 = arith.constant 0 : index
    %c0_10 = arith.constant 0 : index
    %c0_11 = arith.constant 0 : index
    %c0_12 = arith.constant 0 : index
    %12 = vector.load %arg4[%c0_9, %c0_10, %c0_11, %c0_12] : memref<1x8x16x16xf32, #tpu.memory_space<vmem>>, vector<1x8x16x16xf32>
    %13 = vector.shape_cast %12 : vector<1x8x16x16xf32> to vector<8x16x16xf32>
    %14 = vector.shape_cast %11 : vector<8x16x16xf32> to vector<1x8x16x16xf32>
    tpu.vector_store %arg4[%c0_9, %c0_10, %c0_11, %c0_12], %14 {strides = array<i32>} : memref<1x8x16x16xf32, #tpu.memory_space<vmem>>, vector<1x8x16x16xf32>,
    return
  }
  func.func @transform_0(%arg0: i32) -> (i32, i32, i32, i32) {
    %c0_i32 = arith.constant 0 : i32
    %c0_i32_0 = arith.constant 0 : i32
    %c0_i32_1 = arith.constant 0 : i32
    %c0_i32_2 = arith.constant 0 : i32
    return %arg0, %c0_i32, %c0_i32_0, %c0_i32_1 : i32, i32, i32, i32
  }
  func.func @transform_1(%arg0: i32) -> (i32, i32, i32) {
    %c0_i32 = arith.constant 0 : i32
    %c0_i32_0 = arith.constant 0 : i32
    %c0_i32_1 = arith.constant 0 : i32
    %c0_i32_2 = arith.constant 0 : i32
    return %c0_i32, %c0_i32_0, %c0_i32_1 : i32, i32, i32
  }
  func.func @transform_2(%arg0: i32) -> (i32, i32, i32) {
    %c0_i32 = arith.constant 0 : i32
    %c0_i32_0 = arith.constant 0 : i32
    %c0_i32_1 = arith.constant 0 : i32
    %c0_i32_2 = arith.constant 0 : i32
    return %c0_i32, %c0_i32_0, %c0_i32_1 : i32, i32, i32
  }
  func.func @transform_3(%arg0: i32) -> (i32, i32, i32, i32) {
    %c0_i32 = arith.constant 0 : i32
    %c0_i32_0 = arith.constant 0 : i32
    %c0_i32_1 = arith.constant 0 : i32
    %c0_i32_2 = arith.constant 0 : i32
    return %arg0, %c0_i32, %c0_i32_0, %c0_i32_1 : i32, i32, i32, i32
  }
}

</mosaic_0001>

<bundles_post_ra>
// kernel: conv_block_forward.3
= control target key start
LH: loop header
LB: loop body
LE: loop exit
PB: predicated region body
PF: predicated region fallthrough
CT: control target
= control target key end

     0   :  { %8 = vsyncpa [#allocation3], 0  ;;  %s1103_s0 = inlined_call_operand.vmem [shape: bf16[2,8,18,18], index: 0, kind: input, shape index: {}]   ;;  %s1104_s1 = inlined_call_operand.vmem [shape: f32[8,1,1], index: 1, kind: input, shape index: {}]   ;;  %s1105_s2 = inlined_call_operand.vmem [shape: f32[8,1,1], index: 2, kind: input, shape index: {}]   ;;  %s1106_s3 = inlined_call_operand.hbm [shape: f32[2,8,16,16], index: 3, kind: output, shape index: {}]  }
   0x1   :  { %10 = vsyncpa [#allocation3 + $0x1], 0  ;;  %s830_s12 = smov 0   ;;  %s832_s13 = smov 0  }
   0x2   :  { %s834_s14 = smov 0   ;;  %s836_s15 = smov 0  }
   0x3 LB: > { %s851_s16 = sadd.s32 4294967295, %s803_s15   ;;  %s648_s17 = sadd.s32 4294967294, %s803_s15   ;;  %s803_s15 = sphi %s836_s15, %s1112_s15   ;;  %s799_s14 = sphi %s834_s14, %s1111_s14   ;;  %s795_s13 = sphi %s832_s13, %s1110_s13   ;;  %s791_s12 = sphi %s830_s12, %s1109_s12  }
   0x4   : > { %s855_s18 = sadd.s32 1, %s803_s15   ;;  %s91_s19 = sadd.s32 1, %s799_s14 }
   0x5   : > { %s88_s20 = ssub.s32 %s803_s15, %s855_s18  ;;  %p101_p0 = scmp.ne.s32.totalorder %s799_s14, %s795_s13 }
   0x6   : > { %p89_p1 = scmp.eq.s32.totalorder %s88_s20, 0  ;;  %p102_p2 = scmp.eq.s32.totalorder %s851_s16, 1 }
   0x7   : > { %p107_p3 = scmp.ne.s32.totalorder %s795_s13, %s791_s12  ;;  %p108_p4 = scmp.eq.s32.totalorder %s648_s17, 1 }
   0x8   : > { %s866_s21 = scalar_select %p89_p1, %s799_s14, %s91_s19  }
   0x9   : > { %p868_p5 = por %p102_p2, %p101_p0  ;;  %p872_p6 = por %p108_p4, %p107_p3 }
   0xa   : > { %p651_p7 = scmp.ge.s32.totalorder %s803_s15, 1  ;;  %p140_p8 = scmp.lt.s32.totalorder %s803_s15, 3 }
   0xc   : > { %p141_p9 = pnand %p651_p7, %p140_p8 }
   0xd   : > { %v656_v0 = vld [vmem:[%s1104_s1 + $0x2] ss:$0 sm:$0xff] (!%p141_p9)  ;;  %v654_v1 = vld [vmem:[%s1104_s1] ss:$0 sm:$0xff] (!%p141_p9)  ;;  %v805_v2 = vmov (!%p141_p9), 0   ;;  %p164_p10 = scmp.lt.s32.totalorder (!%p141_p9), %s851_s16, 1 }
   0xe   : > { %144 = sbr.rel (%p141_p9) target bundleno = 338 (0x152), region = 32  ;;  %740 = vset.pattern.permute.xlu1 (!%p141_p9), %v805_v2  ;;  %739 = vset.pattern.permute.xlu0 (!%p141_p9), %v805_v2  ;;  %v657_v3 = vld [vmem:[%s1104_s1 + $0x3] ss:$0 sm:$0xff] (!%p141_p9)  ;;  %v655_v4 = vld [vmem:[%s1104_s1 + $0x1] ss:$0 sm:$0xff] (!%p141_p9)  ;;  %s806_s25 = smov (!%p141_p9), 127  }
   0xf   : > { %274 = vperm.xlu1 (!%p141_p9), %740, %v656_v0   ;;  %266 = vperm.xlu0 (!%p141_p9), %739, %v654_v1   ;;  %v659_v5 = vld [vmem:[%s1104_s1 + $0x5] ss:$0 sm:$0xff] (!%p141_p9)  ;;  %v658_v6 = vld [vmem:[%s1104_s1 + $0x4] ss:$0 sm:$0xff] (!%p141_p9)  ;;  %v661_v7 = vld [vmem:[%s1104_s1 + $0x7] ss:$0 sm:$0xff] (!%p141_p9) }
  0x10   : > { %v660_v8 = vld [vmem:[%s1104_s1 + $0x6] ss:$0 sm:$0xff] (!%p141_p9)  ;;  %v663_v9 = vld [vmem:[%s1105_s2 + $0x1] ss:$0 sm:$0xff] (!%p141_p9)  ;;  %v662_v10 = vld [vmem:[%s1105_s2] ss:$0 sm:$0xff] (!%p141_p9) }
  0x11   : > { %v665_v11 = vld [vmem:[%s1105_s2 + $0x3] ss:$0 sm:$0xff] (!%p141_p9)  ;;  %v664_v12 = vld [vmem:[%s1105_s2 + $0x2] ss:$0 sm:$0xff] (!%p141_p9)  ;;  %v667_v13 = vld [vmem:[%s1105_s2 + $0x5] ss:$0 sm:$0xff] (!%p141_p9) }
  0x12   : > { %v666_v14 = vld [vmem:[%s1105_s2 + $0x4] ss:$0 sm:$0xff] (!%p141_p9)  ;;  %v669_v15 = vld [vmem:[%s1105_s2 + $0x7] ss:$0 sm:$0xff] (!%p141_p9)  ;;  %v668_v16 = vld [vmem:[%s1105_s2 + $0x6] ss:$0 sm:$0xff] (!%p141_p9) }
  0x13   : > { %278 = vperm.xlu1 (!%p141_p9), %740, %v657_v3   ;;  %270 = vperm.xlu0 (!%p141_p9), %739, %v655_v4   ;;  %s161_s26 = sand.u32 (!%p141_p9), 1, %s795_s13   ;;  %vm545_vm0 = vcmask (!%p141_p9), 130049   ;;  %vm547_vm1 = vcmask (!%p141_p9), 130048   ;;  %vm549_vm2 = vcmask (!%p141_p9), 122880   ;;  %s675_s29 = sshll.u32 (!%p141_p9), %s851_s16, 11 }
  0x14   : > { %s652_s27 = sshll.u32 (!%p141_p9), %s161_s26, 7  ;;  %s1052_s6 = scalar_lea.hbm (!%p141_p9), %s1106_s3, %s675_s29 }
  0x15   : > { %s165_s11 = scalar_select %p164_p10, %s851_s16, 1 }
  0x16   : > { %s1001_s28 = scalar_lea.vmem [#allocation2], %s652_s27  ;;  %s1062_s16 = scalar_lea.sflag [#allocation3], %s161_s26 }
  0x17   : > { %286 = vperm.xlu1 %740, %v659_v5   ;;  %282 = vperm.xlu0 %739, %v658_v6   ;;  %s695_s17 = smul.u32 96, %s165_s11  ;;  %s586_s30 = sshll.u32 %s1001_s28, 4  ;;  %s1054_s30 = int_to_ptr.vmem [resolvable:$true] %s586_s30 }
  0x18   : > { %s741_s7 = scalar_lea.vmem %s1054_s30, 2048  ;;  %s807_s8 = smov [#allocation2]  }
  0x19   : > { %s933_s24 = scalar_lea.vmem %s1103_s0, %s695_s17  ;;  %p742_p11 = scmp.ne.s32.totalorder %s1054_s30, %s741_s7 }
  0x1a   : > { %v677_v21 = vld [vmem:[%s933_s24] sm:$0xff]   ;;  %v171_v24 = vld [vmem:[%s933_s24 + $0x8] sm:$0x1]  ;;  %v172_v26 = vld [vmem:[%s933_s24 + $0xc] sm:$0xff]   ;;  %s745_s9 = sshll.u32 %s807_s8, 4  ;;  %s746_s9 = int_to_ptr.vmem [resolvable:$false] %s745_s9 }
  0x1b   : > { %294 = vperm.xlu1 %740, %v661_v7   ;;  %290 = vperm.xlu0 %739, %v660_v8   ;;  %v678_v25 = vunpack.c.l.bf16 %v677_v21  ;;  %v679_v27 = vunpack.c.h.bf16 %v677_v21  ;;  %v195_v30 = vunpack.c.l.bf16 %v171_v24  ;;  %v196_v31 = vunpack.c.l.bf16 %v172_v26  ;;  %v174_v33 = vld [vmem:[%s933_s24 + $0x14] sm:$0x1]  ;;  %v692_v40 = vld [vmem:[%s933_s24 + $0x18] sm:$0xff]   ;;  %v177_v51 = vld [vmem:[%s933_s24 + $0x20] sm:$0x1]  ;;  %p743_p12 = pnand %p742_p11, %p868_p5  ;;  %s747_s10 = scalar_lea.vmem %s746_s9, 4096 }
  0x1c   : > { %v197_v37 = vunpack.c.h.bf16 %v172_v26  ;;  %v198_v41 = vunpack.c.l.bf16 %v174_v33  ;;  %v682_v48 = vunpack.c.l.bf16 %v692_v40  ;;  %v683_v50 = vunpack.c.h.bf16 %v692_v40  ;;  %v178_v53 = vld [vmem:[%s933_s24 + $0x24] sm:$0xff]   ;;  %v180_v63 = vld [vmem:[%s933_s24 + $0x2c] sm:$0x1]  ;;  %p748_p0 = scmp.lt.s32.totalorder %s1054_s30, %s746_s9  ;;  %p749_p1 = scmp.lt.s32.totalorder %s747_s10, %s741_s7 }
  0x1d   : > { %v201_v59 = vunpack.c.l.bf16 %v177_v51  ;;  %v202_v62 = vunpack.c.l.bf16 %v178_v53  ;;  %v203_v5 = vunpack.c.h.bf16 %v178_v53  ;;  %v204_v7 = vunpack.c.l.bf16 %v180_v63  ;;  %v186_v33 = vld [vmem:[%s933_s24 + $0x44] sm:$0x1]  ;;  %v189_v51 = vld [vmem:[%s933_s24 + $0x50] sm:$0x1]  ;;  %p744_p13 = pneg %p743_p12 }
  0x1e   : > { %p750_p2 = por %p749_p1, %p748_p0 }
  0x1f   : > { %374 = vperm.xlu1 %740, %v663_v9   ;;  %370 = vperm.xlu0 %739, %v662_v10   ;;  %v693_v9 = vld [vmem:[%s933_s24 + $0x30] sm:$0xff]  }
  0x20   : > { %p751_p3 = pnand %p750_p2, %p744_p13 }
  0x23   : > { %382 = vperm.xlu1 %740, %v665_v11   ;;  %378 = vperm.xlu0 %739, %v664_v12  }
  0x27   : > { %390 = vperm.xlu1 %740, %v667_v13   ;;  %386 = vperm.xlu0 %739, %v666_v14  }
  0x2b   : > { %398 = vperm.xlu1 %740, %v669_v15   ;;  %394 = vperm.xlu0 %739, %v668_v16   ;;  %v686_v15 = vunpack.c.l.bf16 %v693_v9 }
  0x8e   : > { %v275_v17 = vpop.permute.xlu1 %274  ;;  %v267_v18 = vpop.permute.xlu0 %266 }
  0x8f   : > { %v297_v32 = vmul.f32 %v678_v25, %v267_v18  ;;  %v298_v34 = vmul.f32 %v679_v27, %v267_v18  ;;  %v299_v36 = vmul.f32 %v267_v18, %v195_v30  ;;  %v303_v60 = vmul.f32 %v682_v48, %v275_v17  ;;  %v183_v18 = vld [vmem:[%s933_s24 + $0x38] sm:$0x1] }
  0x90   : > { %v304_v61 = vmul.f32 %v683_v50, %v275_v17  ;;  %v305_v4 = vmul.f32 %v275_v17, %v201_v59  ;;  %v687_v17 = vunpack.c.h.bf16 %v693_v9  ;;  %v207_v30 = vunpack.c.l.bf16 %v183_v18 }
  0x92   : > { %v928_v19 = vpop.permute.xlu1 %278  ;;  %v271_v20 = vpop.permute.xlu0 %270 }
  0x93   : > { %v300_v42 = vmul.f32 %v271_v20, %v196_v31  ;;  %v301_v49 = vmul.f32 %v271_v20, %v197_v37  ;;  %v302_v52 = vmul.f32 %v271_v20, %v198_v41  ;;  %v306_v8 = vmul.f32 %v928_v19, %v202_v62  ;;  %v184_v20 = vld [vmem:[%s933_s24 + $0x3c] sm:$0xff]  }
  0x94   : > { %v307_v14 = vmul.f32 %v928_v19, %v203_v5  ;;  %v308_v16 = vmul.f32 %v928_v19, %v204_v7  ;;  %v210_v41 = vunpack.c.l.bf16 %v186_v33 }
  0x96   : > { %v936_v22 = vpop.permute.xlu1 %286  ;;  %v938_v23 = vpop.permute.xlu0 %282 }
  0x97   : > { %v309_v31 = vmul.f32 %v686_v15, %v938_v23  ;;  %v310_v19 = vmul.f32 %v687_v17, %v938_v23 }
  0x9a   : > { %v942_v28 = vpop.permute.xlu1 %294  ;;  %v944_v29 = vpop.permute.xlu0 %290 }
  0x9e   : > { %v371_v35 = vpop.permute.xlu0 %370  ;;  %v375_v38 = vpop.permute.xlu1 %374 }
  0x9f   : > { %v401_v39 = vadd.f32 %v371_v35, %v297_v32  ;;  %v402_v43 = vadd.f32 %v371_v35, %v298_v34  ;;  %v403_v44 = vadd.f32 %v371_v35, %v299_v36  ;;  %v404_v46 = vadd.f32 %v375_v38, %v300_v42 }
  0xa0   : > { %v405_v54 = vadd.f32 %v375_v38, %v301_v49  ;;  %v406_v56 = vadd.f32 %v375_v38, %v302_v52  ;;  %v208_v32 = vunpack.c.l.bf16 %v184_v20  ;;  %v209_v38 = vunpack.c.h.bf16 %v184_v20  ;;  %v190_v52 = vld [vmem:[%s933_s24 + $0x54] sm:$0xff]  }
  0xa1   : > { %v425_v45 = vmax.f32 %v401_v39, 0.0  ;;  %v426_v47 = vmax.f32 %v402_v43, 0.0  ;;  %v427_v55 = vmax.f32 %v403_v44, 0.0  ;;  %v428_v58 = vmax.f32 %v404_v46, 0.0  ;;  %v694_v43 = vld [vmem:[%s933_s24 + $0x48] sm:$0xff]  }
  0xa2   : > { %v379_v57 = vpop.permute.xlu0 %378  ;;  %v429_v1 = vmax.f32 %v405_v54, 0.0  ;;  %v430_v3 = vmax.f32 %v406_v56, 0.0  ;;  %v383_v6 = vpop.permute.xlu1 %382  ;;  %v311_v39 = vmul.f32 %v938_v23, %v207_v30  ;;  %v312_v42 = vmul.f32 %v936_v22, %v208_v32 }
  0xa3   : > { %473 = vrot.lane.b32.xlu0 %v425_v45, %s806_s25  ;;  %475 = vrot.lane.b32.xlu1 %v426_v47, %s806_s25  ;;  %v407_v0 = vadd.f32 %v379_v57, %v303_v60  ;;  %v408_v2 = vadd.f32 %v379_v57, %v304_v61  ;;  %v409_v10 = vadd.f32 %v379_v57, %v305_v4  ;;  %v690_v49 = vunpack.c.l.bf16 %v694_v43 }
  0xa4   : > { %v410_v12 = vadd.f32 %v383_v6, %v306_v8  ;;  %v411_v21 = vadd.f32 %v383_v6, %v307_v14  ;;  %v412_v25 = vadd.f32 %v383_v6, %v308_v16  ;;  %v313_v48 = vmul.f32 %v936_v22, %v209_v38 }
  0xa5   : > { %v431_v11 = vmax.f32 %v407_v0, 0.0  ;;  %v432_v13 = vmax.f32 %v408_v2, 0.0  ;;  %v433_v24 = vmax.f32 %v409_v10, 0.0  ;;  %v314_v23 = vmul.f32 %v936_v22, %v210_v41  ;;  %v192_v22 = vld [vmem:[%s933_s24 + $0x5c] sm:$0x1] }
  0xa6   : > { %v387_v26 = vpop.permute.xlu0 %386  ;;  %v434_v27 = vmax.f32 %v410_v12, 0.0  ;;  %v435_v35 = vmax.f32 %v411_v21, 0.0  ;;  %v436_v37 = vmax.f32 %v412_v25, 0.0  ;;  %v391_v40 = vpop.permute.xlu1 %390  ;;  %v691_v50 = vunpack.c.h.bf16 %v694_v43 }
  0xa7   : > { %477 = vrot.lane.b32.xlu0 %v427_v55, %s806_s25  ;;  %479 = vrot.lane.b32.xlu1 %v428_v58, %s806_s25  ;;  %v413_v34 = vadd.f32 %v387_v26, %v309_v31  ;;  %v414_v36 = vadd.f32 %v387_v26, %v310_v19  ;;  %v415_v44 = vadd.f32 %v387_v26, %v311_v39  ;;  %v213_v58 = vunpack.c.l.bf16 %v189_v51 }
  0xa8   : > { %v416_v46 = vadd.f32 %v391_v40, %v312_v42  ;;  %v417_v53 = vadd.f32 %v391_v40, %v313_v48  ;;  %v418_v55 = vadd.f32 %v391_v40, %v314_v23  ;;  %v315_v59 = vmul.f32 %v690_v49, %v944_v29 }
  0xa9   : > { %v437_v45 = vmax.f32 %v413_v34, 0.0  ;;  %v438_v47 = vmax.f32 %v414_v36, 0.0  ;;  %v439_v54 = vmax.f32 %v415_v44, 0.0  ;;  %v214_v60 = vunpack.c.l.bf16 %v190_v52 }
  0xaa   : > { %v395_v56 = vpop.permute.xlu0 %394  ;;  %v440_v57 = vmax.f32 %v416_v46, 0.0  ;;  %v316_v61 = vmul.f32 %v691_v50, %v944_v29  ;;  %v441_v63 = vmax.f32 %v417_v53, 0.0  ;;  %v215_v2 = vunpack.c.h.bf16 %v190_v52  ;;  %v399_v4 = vpop.permute.xlu1 %398 }
  0xab   : > { %481 = vrot.lane.b32.xlu0 %v429_v1, %s806_s25  ;;  %483 = vrot.lane.b32.xlu1 %v430_v3, %s806_s25  ;;  %v419_v62 = vadd.f32 %v395_v56, %v315_v59  ;;  %v442_v1 = vmax.f32 %v418_v55, 0.0  ;;  %v317_v3 = vmul.f32 %v944_v29, %v213_v58  ;;  %v216_v5 = vunpack.c.l.bf16 %v192_v22 }
  0xac   : > { %v420_v0 = vadd.f32 %v395_v56, %v316_v61  ;;  %v318_v6 = vmul.f32 %v942_v28, %v214_v60 }
  0xad   : > { %v421_v7 = vadd.f32 %v395_v56, %v317_v3  ;;  %v443_v8 = vmax.f32 %v419_v62, 0.0  ;;  %v320_v29 = vmul.f32 %v942_v28, %v216_v5 }
  0xae   : > { %v422_v9 = vadd.f32 %v399_v4, %v318_v6  ;;  %v444_v10 = vmax.f32 %v420_v0, 0.0 }
  0xaf   : > { %485 = vrot.lane.b32.xlu0 %v431_v11, %s806_s25  ;;  %487 = vrot.lane.b32.xlu1 %v432_v13, %s806_s25  ;;  %v319_v11 = vmul.f32 %v942_v28, %v215_v2  ;;  %v445_v13 = vmax.f32 %v421_v7, 0.0  ;;  %v424_v14 = vadd.f32 %v399_v4, %v320_v29 }
  0xb0   : > { %v446_v15 = vmax.f32 %v422_v9, 0.0 }
  0xb1   : > { %v423_v12 = vadd.f32 %v399_v4, %v319_v11  ;;  %v448_v17 = vmax.f32 %v424_v14, 0.0 }
  0xb3   : > { %489 = vrot.lane.b32.xlu0 %v433_v24, %s806_s25  ;;  %491 = vrot.lane.b32.xlu1 %v434_v27, %s806_s25  ;;  %v447_v16 = vmax.f32 %v423_v12, 0.0 }
  0xb7   : > { %493 = vrot.lane.b32.xlu0 %v435_v35, %s806_s25  ;;  %495 = vrot.lane.b32.xlu1 %v436_v37, %s806_s25 }
  0xbb   : > { %497 = vrot.lane.b32.xlu0 %v437_v45, %s806_s25  ;;  %499 = vrot.lane.b32.xlu1 %v438_v47, %s806_s25 }
  0xbf   : > { %501 = vrot.lane.b32.xlu0 %v439_v54, %s806_s25  ;;  %503 = vrot.lane.b32.xlu1 %v440_v57, %s806_s25 }
  0xc3   : > { %505 = vrot.lane.b32.xlu0 %v441_v63, %s806_s25  ;;  %507 = vrot.lane.b32.xlu1 %v442_v1, %s806_s25 }
  0xc7   : > { %509 = vrot.lane.b32.xlu0 %v443_v8, %s806_s25  ;;  %511 = vrot.lane.b32.xlu1 %v444_v10, %s806_s25 }
  0xcb   : > { %513 = vrot.lane.b32.xlu0 %v445_v13, %s806_s25  ;;  %515 = vrot.lane.b32.xlu1 %v446_v15, %s806_s25 }
  0xcf   : > { %517 = vrot.lane.b32.xlu0 %v447_v16, %s806_s25  ;;  %519 = vrot.lane.b32.xlu1 %v448_v17, %s806_s25 }
 0x115   : > { %v474_v28 = vpop.permute.xlu0 %473  ;;  %v476_v18 = vpop.permute.xlu1 %475 }
 0x116   : > { %546 = vst.msk [vmem:[%s1001_s28 - $0x1] sm:$0xfe] %vm545_vm0, %v474_v28 }
 0x117   : > { %548 = vst.msk [vmem:[%s1001_s28 + $0x7] sm:$0xff] %vm547_vm1, %v476_v18 }
 0x119   : > { %v478_v20 = vpop.permute.xlu0 %477  ;;  %v480_v21 = vpop.permute.xlu1 %479 }
 0x11a   : > { %550 = vst.msk [vmem:[%s1001_s28 + $0xf] sm:$0x1] %vm549_vm2, %v478_v20 }
 0x11b   : > { %551 = vst.msk [vmem:[%s1001_s28 + $0xf] sm:$0xfe] %vm545_vm0, %v480_v21 }
 0x11d   : > { %v482_v24 = vpop.permute.xlu0 %481  ;;  %v484_v25 = vpop.permute.xlu1 %483 }
 0x11e   : > { %552 = vst.msk [vmem:[%s1001_s28 + $0x17] sm:$0xff] %vm547_vm1, %v482_v24 }
 0x11f   : > { %553 = vst.msk [vmem:[%s1001_s28 + $0x1f] sm:$0x1] %vm549_vm2, %v484_v25 }
 0x121   : > { %v486_v26 = vpop.permute.xlu0 %485  ;;  %v488_v27 = vpop.permute.xlu1 %487 }
 0x122   : > { %554 = vst.msk [vmem:[%s1001_s28 + $0x1f] sm:$0xfe] %vm545_vm0, %v486_v26 }
 0x123   : > { %555 = vst.msk [vmem:[%s1001_s28 + $0x27] sm:$0xff] %vm547_vm1, %v488_v27 }
 0x125   : > { %v490_v30 = vpop.permute.xlu0 %489  ;;  %v492_v31 = vpop.permute.xlu1 %491 }
 0x126   : > { %556 = vst.msk [vmem:[%s1001_s28 + $0x2f] sm:$0x1] %vm549_vm2, %v490_v30 }
 0x127   : > { %557 = vst.msk [vmem:[%s1001_s28 + $0x2f] sm:$0xfe] %vm545_vm0, %v492_v31 }
 0x129   : > { %v494_v32 = vpop.permute.xlu0 %493  ;;  %v496_v19 = vpop.permute.xlu1 %495 }
 0x12a   : > { %558 = vst.msk [vmem:[%s1001_s28 + $0x37] sm:$0xff] %vm547_vm1, %v494_v32 }
 0x12b   : > { %559 = vst.msk [vmem:[%s1001_s28 + $0x3f] sm:$0x1] %vm549_vm2, %v496_v19 }
 0x12d   : > { %v498_v33 = vpop.permute.xlu0 %497  ;;  %v500_v34 = vpop.permute.xlu1 %499 }
 0x12e   : > { %560 = vst.msk [vmem:[%s1001_s28 + $0x3f] sm:$0xfe] %vm545_vm0, %v498_v33 }
 0x12f   : > { %561 = vst.msk [vmem:[%s1001_s28 + $0x47] sm:$0xff] %vm547_vm1, %v500_v34 }
 0x131   : > { %v502_v35 = vpop.permute.xlu0 %501  ;;  %v504_v36 = vpop.permute.xlu1 %503 }
 0x132   : > { %562 = vst.msk [vmem:[%s1001_s28 + $0x4f] sm:$0x1] %vm549_vm2, %v502_v35 }
 0x133   : > { %563 = vst.msk [vmem:[%s1001_s28 + $0x4f] sm:$0xfe] %vm545_vm0, %v504_v36 }
 0x135   : > { %v506_v37 = vpop.permute.xlu0 %505  ;;  %v508_v38 = vpop.permute.xlu1 %507 }
 0x136   : > { %564 = vst.msk [vmem:[%s1001_s28 + $0x57] sm:$0xff] %vm547_vm1, %v506_v37 }
 0x137   : > { %565 = vst.msk [vmem:[%s1001_s28 + $0x5f] sm:$0x1] %vm549_vm2, %v508_v38 }
 0x139   : > { %v510_v39 = vpop.permute.xlu0 %509  ;;  %v512_v40 = vpop.permute.xlu1 %511 }
 0x13a   : > { %566 = vst.msk [vmem:[%s1001_s28 + $0x5f] sm:$0xfe] %vm545_vm0, %v510_v39 }
 0x13b   : > { %567 = vst.msk [vmem:[%s1001_s28 + $0x67] sm:$0xff] %vm547_vm1, %v512_v40 }
 0x13d   : > { %v514_v41 = vpop.permute.xlu0 %513  ;;  %v516_v42 = vpop.permute.xlu1 %515 }
 0x13e   : > { %568 = vst.msk [vmem:[%s1001_s28 + $0x6f] sm:$0x1] %vm549_vm2, %v514_v41 }
 0x13f   : > { %569 = vst.msk [vmem:[%s1001_s28 + $0x6f] sm:$0xfe] %vm545_vm0, %v516_v42 }
 0x141   : > { %v518_v43 = vpop.permute.xlu0 %517  ;;  %v520_v44 = vpop.permute.xlu1 %519 }
 0x142   : > { %570 = vst.msk [vmem:[%s1001_s28 + $0x77] sm:$0xff] %vm547_vm1, %v518_v43 }
 0x143   : > { %571 = vst.msk [vmem:[%s1001_s28 + $0x7f] sm:$0x1] %vm549_vm2, %v520_v44 }
 0x144   : > { %754 = shalt.err (!%p751_p3)
}
 0x145   : > { %s755_s11 = scalar_lea.hbm %s1052_s6, 2048  ;;  %s759_s20 = scalar_lea.hbm %s1106_s3, 4096 }
 0x146   : > { %p756_p4 = scmp.ne.s32.totalorder %s1052_s6, %s755_s11  ;;  %p760_p9 = scmp.lt.u32.totalorder %s1052_s6, %s1106_s3 }
 0x147   : > { %p761_p10 = scmp.lt.u32.totalorder %s759_s20, %s755_s11  ;;  %p763_p12 = scmp.lt.u32.totalorder %s755_s11, %s1052_s6 }
 0x148   : > { %p757_p7 = pnand %p756_p4, %p868_p5 }
 0x149   : > { %p762_p11 = por %p761_p10, %p760_p9 }
 0x14a   : > { %p758_p8 = pneg %p757_p7 }
 0x14b   : > { %p764_p13 = por %p763_p12, %p762_p11 }
 0x14d   : > { %p765_p0 = pnand %p764_p13, %p758_p8 }
 0x14f   : > { %768 = shalt.err (!%p765_p0)
}
 0x150   : > { %s808_s26 = smov 128   ;;  %s809_s27 = smov 8  }
 0x151   : > { %696 = dma.vmem_to_hbm [thread:$0]  (%p868_p5), %s1054_s30, 2048, %s1052_s6, %s1062_s16, %s808_s26, %s808_s26, %s809_s27  }
 0x152 PF: > { %p702_p1 = scmp.ge.s32.totalorder %s803_s15, 2  ;;  %s601_s28 = sand.u32 1, %s791_s12  }
 0x153   : > { %s602_s29 = scalar_lea.sflag [#allocation3], %s601_s28 }
 0x154   : > { %p699_p2 = pnand %p702_p1, %p872_p6 }
 0x156   : > { %786 = dma.done.wait (!%p699_p2), %s602_s29, 2048  }
 0x157   : > { %788 = vsyncadd (!%p699_p2), %s602_s29, 4294965248  ;;  %p13_p3 = scmp.ge.s32.totalorder %s855_s18, 4   ;;  %s1109_s12 = smov %s795_s13 }
 0x158   : > { %s1110_s13 = smov %s799_s14  ;;  %s1111_s14 = smov %s866_s21 }
 0x159   : > { %s1112_s15 = smov %s855_s18  ;;  %15 = sbr.rel (!%p13_p3) target bundleno = 3 (0x3), region = 67 }
 0x160   :  { %607 = vsyncpa [#allocation3], 1 }
 0x161   :  { %609 = vsyncpa [#allocation3 + $0x1], 1 }

// kernel: conv_block_forward.2
= control target key start
LH: loop header
LB: loop body
LE: loop exit
PB: predicated region body
PF: predicated region fallthrough
CT: control target
= control target key end

     0   :  { %s1757_s21 = smov 0   ;;  %s1950_s0 = inlined_call_operand.vmem [shape: bf16[2,4,362], index: 0, kind: input, shape index: {}]   ;;  %s1951_s1 = inlined_call_operand.vmem [shape: bf16[9,8,4], index: 1, kind: input, shape index: {}]   ;;  %s1952_s2 = inlined_call_operand.vmem [shape: f32[8,1], index: 2, kind: input, shape index: {}]   ;;  %s1953_s3 = inlined_call_operand.vmem [shape: f32[1,324], index: 3, kind: input, shape index: {}]   ;;  %s1954_s4 = inlined_call_operand.vmem [shape: bf16[2,8,324], index: 4, kind: output, shape index: {0}]   ;;  %s1955_s5 = inlined_call_operand.vmem [shape: f32[2,8,1], index: 5, kind: output, shape index: {1}]   ;;  %s1956_s6 = inlined_call_operand.vmem [shape: f32[2,8,1], index: 6, kind: output, shape index: {2}]  }
   0x1 LB: > { %s1549_s22 = sadd.s32 4294967295, %s1708_s21   ;;  %p1553_p0 = scmp.ge.s32.totalorder %s1708_s21, 1  ;;  %s1708_s21 = sphi %s1757_s21, %s17_s21  }
   0x2   : > { %p217_p1 = scmp.lt.s32.totalorder %s1708_s21, 3 }
   0x4   : > { %p218_p2 = pnand %p1553_p0, %p217_p1 }
   0x5   : > { %p255_p3 = scmp.lt.s32.totalorder (!%p218_p2), %s1549_s22, 1  ;;  %v283_v0 = vlaneseq (!%p218_p2)  ;;  %v1710_v1 = vmov (!%p218_p2), 1983009808   ;;  %v1711_v3 = vmov (!%p218_p2), 0.0   ;;  %vm1712_vm0 = vmmov (!%p218_p2), 0   ;;  %s1714_s27 = smov (!%p218_p2), 127  }
   0x6   : > { %221 = sbr.rel (%p218_p2) target bundleno = 576 (0x240), region = 36  ;;  %v281_v2 = vunpack.c.l.s4 (!%p218_p2), %v1710_v1  ;;  %1617 = vmatprep.subr.bf16.mxu1 (!%p218_p2), %v1711_v3  ;;  %1619 = vmatprep.mubr.msk.bf16.mxu1 (!%p218_p2), %vm1712_vm0, %v1711_v3  ;;  %v1713_v6 = vmov (!%p218_p2), 0   ;;  %s1715_s28 = smov (!%p218_p2), 126   ;;  %v1367_v48 = vld [vmem:[%s1952_s2] sm:$0xff] (!%p218_p2)  ;;  %vm308_vm1 = vcmask (!%p218_p2), 1041408   ;;  %vm301_vm2 = vcmask (!%p218_p2), 1039360  }
   0x7   : > { %v1768_v4 = vshrl.u32 (!%p218_p2), %v283_v0, 7  ;;  %350 = vmatprep.mubr.bf16.mxu0 (!%p218_p2), %v1713_v6  ;;  %1693 = vset.pattern.permute.xlu0 (!%p218_p2), %v1713_v6  ;;  %s1716_s29 = smov (!%p218_p2), 110   ;;  %s1717_s30 = smov (!%p218_p2), 109   ;;  %v1558_v53 = vld [vmem:[%s1951_s1 + $0x4] sm:$0xf] (!%p218_p2)  ;;  %vm304_vm3 = vcmask (!%p218_p2), 31744  }
   0x8   : > { %v282_v5 = vunpack.c.0.s8 (!%p218_p2), %v281_v2  ;;  %s1718_s7 = smov (!%p218_p2), 108   ;;  %s1719_s8 = smov (!%p218_p2), 92   ;;  %vm518_vm4 = vcmask (!%p218_p2), 1031168   ;;  %v275_v63 = vld [vmem:[%s1951_s1] sm:$0xf] (!%p218_p2)  ;;  %vm643_vm5 = vcmask (!%p218_p2), 900096  }
   0x9   : > { %s1720_s9 = smov (!%p218_p2), 91   ;;  %s1721_s10 = smov (!%p218_p2), 90   ;;  %vm768_vm6 = vcmask (!%p218_p2), 891904   ;;  %vm893_vm7 = vcmask (!%p218_p2), 883712   ;;  %vm1018_vm8 = vcmask (!%p218_p2), 752640   ;;  %vm1143_vm9 = vcmask (!%p218_p2), 744448  }
   0xa   : > { %v1776_v7 = vsub.s32 (!%p218_p2), %v282_v5, %v1768_v4  ;;  %vm1268_vm10 = vcmask (!%p218_p2), 736256   ;;  %vm1390_vm11 = vcmask (!%p218_p2), 551936   ;;  %vm1413_vm12 = vcmask (!%p218_p2), 556032  }
   0xb   : > { %vm1418_vm13 = vcmask (!%p218_p2), 7168  }
   0xd   : > { %s1958_s22 = smov (!%p255_p3, %s1549_s22), 1 }
   0xe   : > { %s1671_s23 = smul.u32 6, %s1958_s22  ;;  %s1556_s15 = sshll.u32 %s1958_s22, 3 }
   0xf   : > { %s268_s18 = scalar_lea.vmem %s1955_s5, %s1556_s15 }
  0x10   : > { %s1781_s26 = scalar_lea.vmem %s1950_s0, %s1671_s23  ;;  %s272_s23 = scalar_lea.vmem %s1956_s6, %s1556_s15 }
  0x11   : > { %v274_v8 = vld [vmem:[%s1781_s26] sm:$0x3f] }
  0x12   : > { %v1785_v9 = vrot.slane %v274_v8, %v1776_v7  ;;  %v279_v10 = vcombine.high %v274_v8, %v274_v8  ;;  %v492_v11 = vld [vmem:[%s1781_s26] sm:$0x3f] }
  0x13   : > { %v503_v14 = vrot.slane %v492_v11, %v1776_v7  ;;  %v496_v15 = vcombine.high %v492_v11, %v492_v11  ;;  %v617_v17 = vld [vmem:[%s1781_s26] sm:$0x3f]  ;;  %v1565_v11 = vld [vmem:[%s1951_s1 + $0x8] sm:$0xf] }
  0x14   : > { %295 = vrot.lane.b32.xlu0 %v1785_v9, %s1714_s27  ;;  %v1790_v12 = vrot.slane %v279_v10, %v1776_v7  ;;  %v1794_v13 = vcombine.high %v1785_v9, %v1785_v9  ;;  %v628_v19 = vrot.slane %v617_v17, %v1776_v7  ;;  %v621_v20 = vcombine.high %v617_v17, %v617_v17  ;;  %v742_v22 = vld [vmem:[%s1781_s26] sm:$0x3f] }
  0x15   : > { %v511_v16 = vcombine.high %v503_v14, %v503_v14  ;;  %v510_v18 = vrot.slane %v496_v15, %v1776_v7  ;;  %v753_v24 = vrot.slane %v742_v22, %v1776_v7  ;;  %v746_v25 = vcombine.high %v742_v22, %v742_v22  ;;  %v867_v27 = vld [vmem:[%s1781_s26] sm:$0x3f] }
  0x16   : > { %299 = vrot.lane.b32.xlu1 %v1790_v12, %s1714_s27  ;;  %v636_v21 = vcombine.high %v628_v19, %v628_v19  ;;  %v635_v23 = vrot.slane %v621_v20, %v1776_v7  ;;  %v878_v29 = vrot.slane %v867_v27, %v1776_v7  ;;  %v871_v30 = vcombine.high %v867_v27, %v867_v27  ;;  %v992_v32 = vld [vmem:[%s1781_s26] sm:$0x3f]  ;;  %v1569_v20 = vld [vmem:[%s1951_s1 + $0xc] sm:$0xf] }
  0x17   : > { %v761_v26 = vcombine.high %v753_v24, %v753_v24  ;;  %v760_v28 = vrot.slane %v746_v25, %v1776_v7  ;;  %v1003_v34 = vrot.slane %v992_v32, %v1776_v7  ;;  %v996_v35 = vcombine.high %v992_v32, %v992_v32  ;;  %v1117_v37 = vld [vmem:[%s1781_s26] sm:$0x3f] }
  0x18   : > { %297 = vrot.lane.b32.xlu0 %v1794_v13, %s1714_s27  ;;  %v886_v31 = vcombine.high %v878_v29, %v878_v29  ;;  %v885_v33 = vrot.slane %v871_v30, %v1776_v7  ;;  %v1128_v39 = vrot.slane %v1117_v37, %v1776_v7  ;;  %v1121_v40 = vcombine.high %v1117_v37, %v1117_v37  ;;  %v1242_v42 = vld [vmem:[%s1781_s26] sm:$0x3f] }
  0x19   : > { %v1011_v36 = vcombine.high %v1003_v34, %v1003_v34  ;;  %v1010_v38 = vrot.slane %v996_v35, %v1776_v7  ;;  %v1253_v44 = vrot.slane %v1242_v42, %v1776_v7  ;;  %v1246_v45 = vcombine.high %v1242_v42, %v1242_v42 }
  0x1a   : > { %512 = vrot.lane.b32.xlu1 %v503_v14, %s1715_s28  ;;  %v1136_v41 = vcombine.high %v1128_v39, %v1128_v39  ;;  %v1135_v43 = vrot.slane %v1121_v40, %v1776_v7  ;;  %v409_v56 = vsel %vm308_vm1, %v1790_v12, 0  ;;  %v403_v59 = vsel %vm308_vm1, %v1785_v9, 0 }
  0x1b   : > { %v1261_v46 = vcombine.high %v1253_v44, %v1253_v44  ;;  %v1260_v47 = vrot.slane %v1246_v45, %v1776_v7 }
  0x1c   : > { %514 = vrot.lane.b32.xlu0 %v511_v16, %s1715_s28 }
  0x1e   : > { %516 = vrot.lane.b32.xlu1 %v510_v18, %s1715_s28 }
  0x20   : > { %637 = vrot.lane.b32.xlu0 %v628_v19, %s1716_s29 }
  0x22   : > { %639 = vrot.lane.b32.xlu1 %v636_v21, %s1716_s29 }
  0x24   : > { %641 = vrot.lane.b32.xlu0 %v635_v23, %s1716_s29 }
  0x26   : > { %762 = vrot.lane.b32.xlu1 %v753_v24, %s1717_s30 }
  0x28   : > { %764 = vrot.lane.b32.xlu0 %v761_v26, %s1717_s30 }
  0x2a   : > { %766 = vrot.lane.b32.xlu1 %v760_v28, %s1717_s30  ;;  %v1573_v28 = vld [vmem:[%s1951_s1 + $0x10] sm:$0xf] }
  0x2c   : > { %887 = vrot.lane.b32.xlu0 %v878_v29, %s1718_s7 }
  0x2e   : > { %889 = vrot.lane.b32.xlu1 %v886_v31, %s1718_s7 }
  0x30   : > { %891 = vrot.lane.b32.xlu0 %v885_v33, %s1718_s7 }
  0x32   : > { %1012 = vrot.lane.b32.xlu1 %v1003_v34, %s1719_s8 }
  0x34   : > { %1014 = vrot.lane.b32.xlu0 %v1011_v36, %s1719_s8  ;;  %v1577_v36 = vld [vmem:[%s1951_s1 + $0x14] sm:$0xf] }
  0x36   : > { %1016 = vrot.lane.b32.xlu1 %v1010_v38, %s1719_s8 }
  0x38   : > { %1137 = vrot.lane.b32.xlu0 %v1128_v39, %s1720_s9 }
  0x3a   : > { %1139 = vrot.lane.b32.xlu1 %v1136_v41, %s1720_s9 }
  0x3c   : > { %1141 = vrot.lane.b32.xlu0 %v1135_v43, %s1720_s9  ;;  %v1581_v43 = vld [vmem:[%s1951_s1 + $0x18] sm:$0xf]  ;;  %s1672_s9 = smul.u32 12, %s1958_s22 }
  0x3e   : > { %1262 = vrot.lane.b32.xlu1 %v1253_v44, %s1721_s10  ;;  %s264_s14 = scalar_lea.vmem %s1954_s4, %s1672_s9 }
  0x40   : > { %1264 = vrot.lane.b32.xlu0 %v1261_v46, %s1721_s10 }
  0x42   : > { %1266 = vrot.lane.b32.xlu1 %v1260_v47, %s1721_s10 }
  0x44   : > { %1370 = vperm.xlu0 %1693, %v1367_v48  }
  0x86   : > { %v296_v49 = vpop.permute.xlu0 %295 }
  0x88   : > { %v300_v50 = vpop.permute.xlu1 %299 }
  0x89   : > { %v316_v51 = vsel %vm308_vm1, %v300_v50, 0 }
  0x8a   : > { %v298_v52 = vpop.permute.xlu0 %297  ;;  %1618 = vmatpush3.bf16.msra.mxu1 %v316_v51 }
  0x8b   : > { %v303_v54 = vsel %vm301_vm2, %v298_v52, %v300_v50  ;;  %v302_v55 = vsel %vm301_vm2, %v296_v49, %v298_v52  ;;  %1623 = vmatprep.subr.bf16.mxu1 %v1711_v3  ;;  %v1585_v50 = vld [vmem:[%s1951_s1 + $0x1c] sm:$0xf] }
  0x8c   : > { %1559 = vmatprep.subr.msk.bf16.mxu0 %vm308_vm1, %v303_v54  ;;  %v310_v57 = vsel %vm308_vm1, %v302_v55, 0  ;;  %v513_v58 = vpop.permute.xlu1 %512  ;;  %v1589_v54 = vld [vmem:[%s1951_s1 + $0x20] sm:$0xf] }
  0x8d   : > { %319 = vmatpush1.bf16.msra.mxu0 %v310_v57  ;;  %1620 = vmatmul.mubr.msk.bf16.vlgmr.msra.gmra.mrb[0].mxu1 %vm304_vm3, %v1558_v53 }
  0x8e   : > { %1562 = vmatprep.subr.msk.bf16.mxu0 %vm308_vm1, %v1794_v13  ;;  %v515_v60 = vpop.permute.xlu0 %514  ;;  %1624 = vmatpush3.bf16.msra.mxu1 %v409_v56 }
  0x8f   : > { %1625 = vmatprep.mubr.msk.bf16.mxu1 %vm1712_vm0, %v1711_v3  ;;  %1629 = vmatprep.subr.bf16.mxu1 %v1711_v3  ;;  %v519_v1 = vsel %vm518_vm4, %v513_v58, %v515_v60 }
  0x90   : > { %1560 = vmatmul.mubr.msk.bf16.vlgmr.msra.gmra.mrb[0].mxu0 %vm304_vm3, %v1558_v53  ;;  %v517_v61 = vpop.permute.xlu1 %516  ;;  %v525_v7 = vsel %vm308_vm1, %v519_v1, 0 }
  0x91   : > { %412 = vmatpush1.bf16.msra.mxu0 %v403_v59  ;;  %v520_v62 = vsel %vm518_vm4, %v515_v60, %v517_v61  ;;  %443 = vmatprep.mubr.bf16.mxu0 %v1713_v6  ;;  %v531_v2 = vsel %vm308_vm1, %v517_v61, 0 }
  0x92   : > { %1566 = vmatprep.subr.msk.bf16.mxu0 %vm308_vm1, %v520_v62  ;;  %v638_v0 = vpop.permute.xlu0 %637 }
  0x94   : > { %v640_v5 = vpop.permute.xlu1 %639 }
  0x95   : > { %1626 = vmatmul.mubr.msk.bf16.vlgmr.msra.gmra.mrb[4].mxu1 %vm304_vm3, %v275_v63  ;;  %v644_v13 = vsel %vm643_vm5, %v638_v0, %v640_v5 }
  0x96   : > { %1630 = vmatpush3.bf16.msra.mxu1 %v531_v2  ;;  %1631 = vmatprep.mubr.msk.bf16.mxu1 %vm1712_vm0, %v1711_v3  ;;  %v642_v8 = vpop.permute.xlu0 %641  ;;  %v650_v16 = vsel %vm308_vm1, %v644_v13, 0 }
  0x97   : > { %v645_v9 = vsel %vm643_vm5, %v640_v5, %v642_v8  ;;  %1635 = vmatprep.subr.bf16.mxu1 %v1711_v3  ;;  %v656_v14 = vsel %vm308_vm1, %v642_v8, 0 }
  0x98   : > { %1563 = vmatmul.mubr.msk.bf16.vlgmr.msra.gmra.mrb[4].mxu0 %vm304_vm3, %v275_v63  ;;  %v763_v10 = vpop.permute.xlu1 %762 }
  0x99   : > { %534 = vmatpush1.bf16.msra.mxu0 %v525_v7  ;;  %565 = vmatprep.mubr.bf16.mxu0 %v1713_v6 }
  0x9a   : > { %1570 = vmatprep.subr.msk.bf16.mxu0 %vm308_vm1, %v645_v9  ;;  %v765_v12 = vpop.permute.xlu0 %764 }
  0x9b   : > { %v769_v21 = vsel %vm768_vm6, %v763_v10, %v765_v12 }
  0x9c   : > { %v767_v15 = vpop.permute.xlu1 %766  ;;  %v775_v24 = vsel %vm308_vm1, %v769_v21, 0 }
  0x9d   : > { %1632 = vmatmul.mubr.msk.bf16.vlgmr.msra.gmra.mrb[8].mxu1 %vm304_vm3, %v1565_v11  ;;  %v770_v18 = vsel %vm768_vm6, %v765_v12, %v767_v15  ;;  %v781_v22 = vsel %vm308_vm1, %v767_v15, 0 }
  0x9e   : > { %1636 = vmatpush3.bf16.msra.mxu1 %v656_v14  ;;  %1637 = vmatprep.mubr.msk.bf16.mxu1 %vm1712_vm0, %v1711_v3  ;;  %v888_v17 = vpop.permute.xlu0 %887 }
  0x9f   : > { %1641 = vmatprep.subr.bf16.mxu1 %v1711_v3 }
  0xa0   : > { %1567 = vmatmul.mubr.msk.bf16.vlgmr.msra.gmra.mrb[8].mxu0 %vm304_vm3, %v1565_v11  ;;  %v890_v19 = vpop.permute.xlu1 %889 }
  0xa1   : > { %659 = vmatpush1.bf16.msra.mxu0 %v650_v16  ;;  %690 = vmatprep.mubr.bf16.mxu0 %v1713_v6  ;;  %v894_v29 = vsel %vm893_vm7, %v888_v17, %v890_v19 }
  0xa2   : > { %1574 = vmatprep.subr.msk.bf16.mxu0 %vm308_vm1, %v770_v18  ;;  %v892_v23 = vpop.permute.xlu0 %891  ;;  %v900_v32 = vsel %vm308_vm1, %v894_v29, 0 }
  0xa3   : > { %v895_v26 = vsel %vm893_vm7, %v890_v19, %v892_v23  ;;  %v906_v30 = vsel %vm308_vm1, %v892_v23, 0 }
  0xa4   : > { %v1013_v25 = vpop.permute.xlu1 %1012 }
  0xa5   : > { %1638 = vmatmul.mubr.msk.bf16.vlgmr.msra.gmra.mrb[12].mxu1 %vm304_vm3, %v1569_v20 }
  0xa6   : > { %1642 = vmatpush3.bf16.msra.mxu1 %v781_v22  ;;  %1643 = vmatprep.mubr.msk.bf16.mxu1 %vm1712_vm0, %v1711_v3  ;;  %v1015_v27 = vpop.permute.xlu0 %1014 }
  0xa7   : > { %1647 = vmatprep.subr.bf16.mxu1 %v1711_v3  ;;  %v1019_v37 = vsel %vm1018_vm8, %v1013_v25, %v1015_v27 }
  0xa8   : > { %1571 = vmatmul.mubr.msk.bf16.vlgmr.msra.gmra.mrb[12].mxu0 %vm304_vm3, %v1569_v20  ;;  %v1017_v31 = vpop.permute.xlu1 %1016  ;;  %v1025_v40 = vsel %vm308_vm1, %v1019_v37, 0 }
  0xa9   : > { %784 = vmatpush1.bf16.msra.mxu0 %v775_v24  ;;  %815 = vmatprep.mubr.bf16.mxu0 %v1713_v6  ;;  %v1020_v34 = vsel %vm1018_vm8, %v1015_v27, %v1017_v31  ;;  %v1031_v38 = vsel %vm308_vm1, %v1017_v31, 0 }
  0xaa   : > { %1578 = vmatprep.subr.msk.bf16.mxu0 %vm308_vm1, %v895_v26  ;;  %v1138_v33 = vpop.permute.xlu0 %1137 }
  0xac   : > { %v1140_v35 = vpop.permute.xlu1 %1139 }
  0xad   : > { %1644 = vmatmul.mubr.msk.bf16.vlgmr.msra.gmra.mrb[16].mxu1 %vm304_vm3, %v1573_v28  ;;  %v1144_v44 = vsel %vm1143_vm9, %v1138_v33, %v1140_v35 }
  0xae   : > { %1648 = vmatpush3.bf16.msra.mxu1 %v906_v30  ;;  %1649 = vmatprep.mubr.msk.bf16.mxu1 %vm1712_vm0, %v1711_v3  ;;  %v1142_v39 = vpop.permute.xlu0 %1141  ;;  %v1150_v48 = vsel %vm308_vm1, %v1144_v44, 0 }
  0xaf   : > { %1653 = vmatprep.subr.bf16.mxu1 %v1711_v3  ;;  %v1145_v42 = vsel %vm1143_vm9, %v1140_v35, %v1142_v39  ;;  %v1156_v45 = vsel %vm308_vm1, %v1142_v39, 0 }
  0xb0   : > { %1575 = vmatmul.mubr.msk.bf16.vlgmr.msra.gmra.mrb[16].mxu0 %vm304_vm3, %v1573_v28  ;;  %v1263_v41 = vpop.permute.xlu1 %1262 }
  0xb1   : > { %909 = vmatpush1.bf16.msra.mxu0 %v900_v32  ;;  %940 = vmatprep.mubr.bf16.mxu0 %v1713_v6 }
  0xb2   : > { %1582 = vmatprep.subr.msk.bf16.mxu0 %vm308_vm1, %v1020_v34  ;;  %v1265_v46 = vpop.permute.xlu0 %1264 }
  0xb3   : > { %v1269_v51 = vsel %vm1268_vm10, %v1263_v41, %v1265_v46 }
  0xb4   : > { %v1267_v47 = vpop.permute.xlu1 %1266  ;;  %v1275_v53 = vsel %vm308_vm1, %v1269_v51, 0 }
  0xb5   : > { %1650 = vmatmul.mubr.msk.bf16.vlgmr.msra.gmra.mrb[20].mxu1 %vm304_vm3, %v1577_v36  ;;  %v1270_v49 = vsel %vm1268_vm10, %v1265_v46, %v1267_v47  ;;  %v1281_v52 = vsel %vm308_vm1, %v1267_v47, 0 }
  0xb6   : > { %1654 = vmatpush3.bf16.msra.mxu1 %v1031_v38  ;;  %1655 = vmatprep.mubr.msk.bf16.mxu1 %vm1712_vm0, %v1711_v3 }
  0xb7   : > { %1659 = vmatprep.subr.bf16.mxu1 %v1711_v3 }
  0xb8   : > { %1579 = vmatmul.mubr.msk.bf16.vlgmr.msra.gmra.mrb[20].mxu0 %vm304_vm3, %v1577_v36 }
  0xb9   : > { %1034 = vmatpush1.bf16.msra.mxu0 %v1025_v40  ;;  %1065 = vmatprep.mubr.bf16.mxu0 %v1713_v6 }
  0xba   : > { %1586 = vmatprep.subr.msk.bf16.mxu0 %vm308_vm1, %v1145_v42 }
  0xbd   : > { %1656 = vmatmul.mubr.msk.bf16.vlgmr.msra.gmra.mrb[24].mxu1 %vm304_vm3, %v1581_v43 }
  0xbe   : > { %1660 = vmatpush3.bf16.msra.mxu1 %v1156_v45  ;;  %1661 = vmatprep.mubr.msk.bf16.mxu1 %vm1712_vm0, %v1711_v3 }
  0xbf   : > { %1665 = vmatprep.subr.bf16.mxu1 %v1711_v3 }
  0xc0   : > { %1583 = vmatmul.mubr.msk.bf16.vlgmr.msra.gmra.mrb[24].mxu0 %vm304_vm3, %v1581_v43 }
  0xc1   : > { %1159 = vmatpush1.bf16.msra.mxu0 %v1150_v48  ;;  %1190 = vmatprep.mubr.bf16.mxu0 %v1713_v6 }
  0xc2   : > { %1590 = vmatprep.subr.msk.bf16.mxu0 %vm308_vm1, %v1270_v49 }
  0xc5   : > { %1662 = vmatmul.mubr.msk.bf16.vlgmr.msra.gmra.mrb[28].mxu1 %vm304_vm3, %v1585_v50 }
  0xc6   : > { %1666 = vmatpush3.bf16.msra.mxu1 %v1281_v52  ;;  %1667 = vmatprep.mubr.msk.bf16.mxu1 %vm1712_vm0, %v1711_v3 }
  0xc8   : > { %1587 = vmatmul.mubr.msk.bf16.vlgmr.msra.gmra.mrb[28].mxu0 %vm304_vm3, %v1585_v50 }
  0xc9   : > { %1284 = vmatpush1.bf16.msra.mxu0 %v1275_v53  ;;  %1315 = vmatprep.mubr.bf16.mxu0 %v1713_v6 }
  0xcd   : > { %1668 = vmatmul.mubr.msk.bf16.vlgmr.msra.gmra.mrb[32].mxu1 %vm304_vm3, %v1589_v54 }
  0xd0   : > { %1591 = vmatmul.mubr.msk.bf16.vlgmr.msra.gmra.mrb[32].mxu0 %vm304_vm3, %v1589_v54 }
 0x160   : > { %v393_v55 = vpop.f32.mrb[0].mxu1 }
 0x161   : > { %v1621_v56 = vpop.f32.mrb[1].mxu1 }
 0x162   : > { %v396_v57 = vpop.f32.mrb[2].mxu1 }
 0x163   : > { %v352_v58 = vpop.f32.mrb[0].mxu0  ;;  %v1622_v59 = vpop.f32.mrb[3].mxu1 }
 0x164   : > { %v354_v60 = vpop.f32.mrb[1].mxu0 }
 0x165   : > { %v356_v3 = vpop.f32.mrb[2].mxu0 }
 0x166   : > { %v357_v61 = vpop.f32.mrb[3].mxu0 }
 0x168   : > { %v486_v62 = vpop.f32.mrb[4].mxu1 }
 0x169   : > { %v487_v63 = vadd.f32 %v486_v62, %v393_v55  ;;  %v1627_v0 = vpop.f32.mrb[5].mxu1 }
 0x16a   : > { %v489_v6 = vpop.f32.mrb[6].mxu1 }
 0x16b   : > { %v445_v1 = vpop.f32.mrb[4].mxu0  ;;  %v1628_v2 = vpop.f32.mrb[7].mxu1 }
 0x16c   : > { %v446_v5 = vadd.f32 %v445_v1, %v352_v58  ;;  %v447_v7 = vpop.f32.mrb[5].mxu0 }
 0x16d   : > { %v448_v8 = vadd.f32 %v447_v7, %v354_v60  ;;  %v449_v9 = vpop.f32.mrb[6].mxu0 }
 0x16e   : > { %v450_v10 = vpop.f32.mrb[7].mxu0 }
 0x170   : > { %v608_v11 = vpop.f32.mrb[8].mxu1 }
 0x171   : > { %v616_v12 = vadd.f32 %v608_v11, %v487_v63  ;;  %v1633_v13 = vpop.f32.mrb[9].mxu1 }
 0x172   : > { %v611_v14 = vpop.f32.mrb[10].mxu1 }
 0x173   : > { %v567_v15 = vpop.f32.mrb[8].mxu0  ;;  %v1634_v16 = vpop.f32.mrb[11].mxu1 }
 0x174   : > { %v614_v17 = vadd.f32 %v567_v15, %v446_v5  ;;  %v569_v18 = vpop.f32.mrb[9].mxu0  ;;  %v1371_v15 = vpop.permute.xlu0 %1370  ;;  %v1396_v16 = vsub.s32 0, %v1768_v4 }
 0x175   : > { %v615_v19 = vadd.f32 %v569_v18, %v448_v8  ;;  %v571_v20 = vpop.f32.mrb[10].mxu0 }
 0x176   : > { %v572_v21 = vpop.f32.mrb[11].mxu0  ;;  %v1392_v20 = vld [vmem:[%s1953_s3] sm:$0x7] }
 0x177   : > { %v1400_v21 = vsub.s32 1, %v1768_v4 }
 0x178   : > { %v733_v22 = vpop.f32.mrb[12].mxu1 }
 0x179   : > { %v741_v23 = vadd.f32 %v733_v22, %v616_v12  ;;  %v1639_v24 = vpop.f32.mrb[13].mxu1 }
 0x17a   : > { %v736_v25 = vpop.f32.mrb[14].mxu1 }
 0x17b   : > { %v692_v26 = vpop.f32.mrb[12].mxu0  ;;  %v1640_v27 = vpop.f32.mrb[15].mxu1 }
 0x17c   : > { %v739_v28 = vadd.f32 %v692_v26, %v614_v17  ;;  %v694_v29 = vpop.f32.mrb[13].mxu0  ;;  %v1404_v17 = vsub.s32 2, %v1768_v4 }
 0x17d   : > { %v740_v30 = vadd.f32 %v694_v29, %v615_v19  ;;  %v696_v31 = vpop.f32.mrb[14].mxu0 }
 0x17e   : > { %v697_v32 = vpop.f32.mrb[15].mxu0  ;;  %v1405_v29 = vrot.slane %v1392_v20, %v1404_v17 }
 0x180   : > { %v858_v33 = vpop.f32.mrb[16].mxu1 }
 0x181   : > { %v866_v34 = vadd.f32 %v858_v33, %v741_v23  ;;  %v1645_v35 = vpop.f32.mrb[17].mxu1  ;;  %v1401_v33 = vrot.slane %v1392_v20, %v1400_v21 }
 0x182   : > { %v861_v36 = vpop.f32.mrb[18].mxu1 }
 0x183   : > { %v817_v37 = vpop.f32.mrb[16].mxu0  ;;  %v1646_v38 = vpop.f32.mrb[19].mxu1 }
 0x184   : > { %v864_v39 = vadd.f32 %v817_v37, %v739_v28  ;;  %v819_v40 = vpop.f32.mrb[17].mxu0  ;;  %v1397_v28 = vrot.slane %v1392_v20, %v1396_v16 }
 0x185   : > { %v865_v41 = vadd.f32 %v819_v40, %v740_v30  ;;  %v821_v42 = vpop.f32.mrb[18].mxu0 }
 0x186   : > { %v822_v43 = vpop.f32.mrb[19].mxu0 }
 0x188   : > { %v983_v44 = vpop.f32.mrb[20].mxu1 }
 0x189   : > { %v991_v45 = vadd.f32 %v983_v44, %v866_v34  ;;  %v1651_v46 = vpop.f32.mrb[21].mxu1 }
 0x18a   : > { %v986_v47 = vpop.f32.mrb[22].mxu1 }
 0x18b   : > { %v942_v48 = vpop.f32.mrb[20].mxu0  ;;  %v1652_v49 = vpop.f32.mrb[23].mxu1 }
 0x18c   : > { %v989_v50 = vadd.f32 %v942_v48, %v864_v39  ;;  %v944_v51 = vpop.f32.mrb[21].mxu0 }
 0x18d   : > { %v990_v52 = vadd.f32 %v944_v51, %v865_v41  ;;  %v946_v53 = vpop.f32.mrb[22].mxu0 }
 0x18e   : > { %v947_v54 = vpop.f32.mrb[23].mxu0 }
 0x190   : > { %v1108_v55 = vpop.f32.mrb[24].mxu1 }
 0x191   : > { %v1116_v56 = vadd.f32 %v1108_v55, %v991_v45  ;;  %v1657_v57 = vpop.f32.mrb[25].mxu1 }
 0x192   : > { %v1111_v58 = vpop.f32.mrb[26].mxu1 }
 0x193   : > { %v1067_v59 = vpop.f32.mrb[24].mxu0  ;;  %v1658_v60 = vpop.f32.mrb[27].mxu1 }
 0x194   : > { %v1114_v3 = vadd.f32 %v1067_v59, %v989_v50  ;;  %v1069_v61 = vpop.f32.mrb[25].mxu0 }
 0x195   : > { %v1115_v62 = vadd.f32 %v1069_v61, %v990_v52  ;;  %v1071_v63 = vpop.f32.mrb[26].mxu0 }
 0x196   : > { %v1072_v0 = vpop.f32.mrb[27].mxu0 }
 0x198   : > { %v1233_v6 = vpop.f32.mrb[28].mxu1 }
 0x199   : > { %v1241_v1 = vadd.f32 %v1233_v6, %v1116_v56  ;;  %v1663_v2 = vpop.f32.mrb[29].mxu1 }
 0x19a   : > { %v1236_v5 = vpop.f32.mrb[30].mxu1 }
 0x19b   : > { %v1192_v7 = vpop.f32.mrb[28].mxu0  ;;  %v1664_v8 = vpop.f32.mrb[31].mxu1 }
 0x19c   : > { %v1239_v9 = vadd.f32 %v1192_v7, %v1114_v3  ;;  %v1194_v10 = vpop.f32.mrb[29].mxu0 }
 0x19d   : > { %v1240_v11 = vadd.f32 %v1194_v10, %v1115_v62  ;;  %v1196_v12 = vpop.f32.mrb[30].mxu0 }
 0x19e   : > { %v1197_v13 = vpop.f32.mrb[31].mxu0 }
 0x1a0   : > { %v1358_v14 = vpop.f32.mrb[32].mxu1 }
 0x1a1   : > { %v1366_v18 = vadd.f32 %v1358_v14, %v1241_v1  ;;  %v1669_v19 = vpop.f32.mrb[33].mxu1 }
 0x1a2   : > { %v1361_v22 = vpop.f32.mrb[34].mxu1 }
 0x1a3   : > { %v1375_v23 = vadd.f32 %v1371_v15, %v1366_v18  ;;  %v1317_v24 = vpop.f32.mrb[32].mxu0  ;;  %v1670_v25 = vpop.f32.mrb[35].mxu1 }
 0x1a4   : > { %v1364_v26 = vadd.f32 %v1317_v24, %v1239_v9  ;;  %v1319_v27 = vpop.f32.mrb[33].mxu0 }
 0x1a5   : > { %v1598_v30 = vpack.c.bf16 %v1375_v23, %v1375_v23  ;;  %v1365_v31 = vadd.f32 %v1319_v27, %v1240_v11  ;;  %v1321_v32 = vpop.f32.mrb[34].mxu0  ;;  %v1422_v4 = vmul.f32 %v1375_v23, %v1375_v23  ;;  %v1411_v39 = vmul.f32 %v1405_v29, %v1375_v23 }
 0x1a6   : > { %v1373_v34 = vadd.f32 %v1371_v15, %v1364_v26  ;;  %v1322_v35 = vpop.f32.mrb[35].mxu0 }
 0x1a7   : > { %v1374_v36 = vadd.f32 %v1371_v15, %v1365_v31  ;;  %1391 = vst.msk [vmem:[%s264_s14 + $0x8] sm:$0xf] %vm1390_vm11, %v1598_v30  ;;  %v1425_v44 = vmul.f32 %v1422_v4, %v1405_v29  ;;  %v1414_v47 = vsel %vm1413_vm12, %v1411_v39, 0.0 }
 0x1a8   : > { %v1420_v37 = vmul.f32 %v1373_v34, %v1373_v34  ;;  %v1409_v38 = vmul.f32 %v1397_v28, %v1373_v34 }
 0x1a9   : > { %v1597_v40 = vpack.c.bf16 %v1374_v36, %v1373_v34  ;;  %v1421_v41 = vmul.f32 %v1374_v36, %v1374_v36  ;;  %v1410_v42 = vmul.f32 %v1401_v33, %v1374_v36  ;;  %v1427_v50 = vsel %vm1413_vm12, %v1425_v44, 0.0 }
 0x1aa   : > { %v1423_v43 = vmul.f32 %v1420_v37, %v1397_v28 }
 0x1ab   : > { %1389 = vst [vmem:[%s264_s14] sm:$0xff] %v1597_v40  ;;  %v1412_v45 = vadd.f32 %v1410_v42, %v1409_v38  ;;  %v1424_v46 = vmul.f32 %v1421_v41, %v1401_v33 }
 0x1ad   : > { %v1415_v48 = vadd.f32 %v1414_v47, %v1412_v45  ;;  %v1426_v49 = vadd.f32 %v1424_v46, %v1423_v43 }
 0x1af   : > { %1416 = vadd.xlane.f32.xlu1 %v1415_v48  ;;  %v1428_v51 = vadd.f32 %v1427_v50, %v1426_v49 }
 0x1b1   : > { %1429 = vadd.xlane.f32.xlu0 %v1428_v51 }
 0x23c   : > { %v1417_v52 = vpop.xlane.xlu1 %1416 }
 0x23d   : > { %1419 = vst.msk [vmem:[%s268_s18] sm:$0xff] %vm1418_vm13, %v1417_v52 }
 0x23e   : > { %v1430_v53 = vpop.xlane.xlu0 %1429 }
 0x23f   : > { %1431 = vst.msk [vmem:[%s272_s23] sm:$0xff] %vm1418_vm13, %v1430_v53 }
 0x240 PF: > { %s17_s21 = sadd.s32 1, %s1708_s21  }
 0x241   : > { %p14_p4 = scmp.ge.s32.totalorder %s17_s21, 4  }
 0x243   :  { %16 = sbr.rel (!%p14_p4) target bundleno = 1 (0x1), region = 98 }

</bundles_post_ra>
